<compile_context>
chip_gen: v7x
topology: tpu7x:2x2x1
jax: 0.10.0
libtpu: 0.0.40
codegen_flags: <defaults>
</compile_context>

<pallas_src>
import math
import jax
import jax.numpy as jnp
from jax.experimental import pallas as pl
from jax.experimental.pallas import tpu as pltpu

# ---- small, module-consistent hyperparameters ------------------------------
B, N, D = 2, 8, 32          # batch, seq len, embedding dim
HEADS, DIM_HEAD = 4, 8      # heads * dim_head = inner_dim
INNER = HEADS * DIM_HEAD    # 32
MLP = 64                    # mlp_dim
DEPTH = 2                   # number of (attn, ff) layers
EPS = 1e-5                  # nn.LayerNorm default eps
SCALE = DIM_HEAD ** -0.5
_SQRT2 = math.sqrt(2.0)
BN = B * N                  # 16 rows (b, n)
NEG = -1e30                 # additive cross-batch mask value


def _gelu_exact(x):
    # nn.GELU() default = exact erf-based GELU
    return 0.5 * x * (1.0 + jax.lax.erf(x / _SQRT2))


def _layernorm(x, g, b):
    mu = jnp.mean(x, axis=-1, keepdims=True)
    var = jnp.mean((x - mu) ** 2, axis=-1, keepdims=True)
    return (x - mu) * jax.lax.rsqrt(var + EPS) * g + b


# ---------------------------------------------------------------------------
# Fused kernel: whole forward pass, everything VMEM-resident.
# ---------------------------------------------------------------------------
def transformer_kernel(x_ref, mask_ref, ln_g_ref, ln_b_ref, a_ref, c_ref,
                       bo_ref, w1_ref, b1_ref, w2_ref, b2_ref,
                       fg_ref, fb_ref, o_ref, s_ref):
    x = x_ref[...]                                            # (BN, D)
    mask = mask_ref[...]                                      # (BN, BN)

    for layer in range(DEPTH):                                # static unroll
        # ---------------- Attention block (pre-norm) ----------------
        xn = _layernorm(x, ln_g_ref[layer], ln_b_ref[layer])  # (BN, D)
        # Lane-dense combined-weight projections (scale already folded in a).
        y = jnp.dot(xn, a_ref[layer],
                    preferred_element_type=jnp.float32)       # (BN, HEADS*D)
        z = jnp.dot(xn, c_ref[layer],
                    preferred_element_type=jnp.float32)       # (BN, HEADS*D)

        # Per-head masked score tiles, staged at free sublane offsets.
        for h in range(HEADS):                                # static unroll
            s_h = jax.lax.dot_general(
                y[:, h * D:(h + 1) * D], xn, (((1,), (1,)), ((), ())),
                preferred_element_type=jnp.float32)           # (BN, BN)
            s_ref[h * BN:(h + 1) * BN, :] = s_h + mask

        # ONE fused softmax over all heads/batches: (HEADS*BN, BN) = (64, 16).
        s_all = s_ref[...]
        m = jnp.max(s_all, axis=-1, keepdims=True)
        p = jnp.exp(s_all - m)
        inv = pl.reciprocal(jnp.sum(p, axis=-1, keepdims=True), approx=True)
        attn = p * inv                                        # (64, 16)

        # Per-head (attn @ (xn @ C_h)) accumulated directly into the projected
        # output — no concatenates, no separate wo matmul.
        proj = jnp.zeros((BN, D), jnp.float32)
        for h in range(HEADS):                                # static unroll
            proj = proj + jnp.dot(attn[h * BN:(h + 1) * BN, :],
                                  z[:, h * D:(h + 1) * D],
                                  preferred_element_type=jnp.float32)
        x = x + proj + bo_ref[layer]                          # residual + bias

        # ---------------- FeedForward block (no norm in the module) --------
        hmid = jnp.dot(x, w1_ref[layer],
                       preferred_element_type=jnp.float32) + b1_ref[layer]
        hmid = _gelu_exact(hmid)
        x = x + jnp.dot(hmid, w2_ref[layer],
                        preferred_element_type=jnp.float32) + b2_ref[layer]

    # ---------------- Final LayerNorm + single HBM writeback ----------------
    o_ref[...] = _layernorm(x, fg_ref[...], fb_ref[...])


# ---------------------------------------------------------------------------
# pallas_call wrapper: one fused call, no grid, full arrays resident in VMEM.
# ---------------------------------------------------------------------------
_VMEM_SPEC = pl.BlockSpec(memory_space=pltpu.MemorySpace.VMEM)
_NUM_INPUTS = 13


def transformer_forward(x, kp):
    xf = x.reshape(BN, D)                                     # free wrapper reshape
    out = pl.pallas_call(
        transformer_kernel,
        out_shape=jax.ShapeDtypeStruct((BN, D), jnp.float32),
        in_specs=[_VMEM_SPEC] * _NUM_INPUTS,
        out_specs=_VMEM_SPEC,
        scratch_shapes=[pltpu.VMEM((HEADS * BN, BN), jnp.float32)],
    )(xf, kp["mask"], kp["ln_g"], kp["ln_b"], kp["a_stack"], kp["c_stack"],
      kp["bo"], kp["w1"], kp["b1"], kp["w2"], kp["b2"],
      kp["final_g"], kp["final_b"])
    return out.reshape(B, N, D)


# ---------------------------------------------------------------------------
# Parameter init (PyTorch-layout) + host-side kernel-parameter preparation
# ---------------------------------------------------------------------------
def _linear_init(key, fan_in, fan_out):
    bound = 1.0 / math.sqrt(fan_in)
    return jax.random.uniform(key, (fan_in, fan_out), jnp.float32, -bound, bound)


def init_params(key):
    wqkv, wo, bo, w1, b1, w2, b2 = [], [], [], [], [], [], []
    for _ in range(DEPTH):
        key, k1, k2, k3, k4, k5, k6 = jax.random.split(key, 7)
        wqkv.append(_linear_init(k1, D, 3 * INNER))
        wo.append(_linear_init(k2, INNER, D))
        bo.append(jax.random.uniform(k3, (1, D), jnp.float32,
                                     -1.0 / math.sqrt(INNER), 1.0 / math.sqrt(INNER)))
        w1.append(_linear_init(k4, D, MLP))
        b1.append(jax.random.uniform(k5, (1, MLP), jnp.float32,
                                     -1.0 / math.sqrt(D), 1.0 / math.sqrt(D)))
        w2.append(_linear_init(k6, MLP, D))
        b2.append(jnp.zeros((1, D), jnp.float32))
    return dict(
        ln_g=jnp.ones((DEPTH, 1, D), jnp.float32),
        ln_b=jnp.zeros((DEPTH, 1, D), jnp.float32),
        wqkv=jnp.stack(wqkv),            # (DEPTH, D, 3*INNER)
        wo=jnp.stack(wo),                # (DEPTH, INNER, D)
        bo=jnp.stack(bo),                # (DEPTH, 1, D)
        w1=jnp.stack(w1),                # (DEPTH, D, MLP)
        b1=jnp.stack(b1),                # (DEPTH, 1, MLP)
        w2=jnp.stack(w2),                # (DEPTH, MLP, D)
        b2=jnp.stack(b2),                # (DEPTH, 1, D)
        final_g=jnp.ones((1, D), jnp.float32),
        final_b=jnp.zeros((1, D), jnp.float32))


def prepare_kernel_params(params):
    """Host-side (free) algebra: fold scale, combine Wq/Wk and Wv/Wo per head."""
    hp = jax.lax.Precision.HIGHEST
    wqkv = params["wqkv"]                                     # (DEPTH, D, 3*INNER)
    wq = wqkv[:, :, 0 * INNER:1 * INNER].reshape(DEPTH, D, HEADS, DIM_HEAD)
    wk = wqkv[:, :, 1 * INNER:2 * INNER].reshape(DEPTH, D, HEADS, DIM_HEAD)
    wv = wqkv[:, :, 2 * INNER:3 * INNER].reshape(DEPTH, D, HEADS, DIM_HEAD)
    wo = params["wo"].reshape(DEPTH, HEADS, DIM_HEAD, D)
    # A_h = scale * Wq_h @ Wk_h^T  (D, D);  C_h = Wv_h @ Wo_h  (D, D)
    a = SCALE * jnp.einsum("ldhe,lfhe->lhdf", wq, wk, precision=hp)
    c = jnp.einsum("ldhe,lhef->lhdf", wv, wo, precision=hp)
    a_stack = a.transpose(0, 2, 1, 3).reshape(DEPTH, D, HEADS * D)   # heads on lanes
    c_stack = c.transpose(0, 2, 1, 3).reshape(DEPTH, D, HEADS * D)
    # Additive mask forbidding cross-batch attention in the joint (BN, BN) tile.
    row = jnp.arange(BN) // N
    mask = jnp.where(row[:, None] == row[None, :], 0.0, NEG).astype(jnp.float32)
    return dict(mask=mask,
                ln_g=params["ln_g"], ln_b=params["ln_b"],
                a_stack=a_stack, c_stack=c_stack, bo=params["bo"],
                w1=params["w1"], b1=params["b1"],
                w2=params["w2"], b2=params["b2"],
                final_g=params["final_g"], final_b=params["final_b"])


# ---------------------------------------------------------------------------
# Pure-JAX reference (standard per-head formulation, PyTorch semantics)
# ---------------------------------------------------------------------------
def _ln_ref(x, g, b):
    mu = jnp.mean(x, axis=-1, keepdims=True)
    var = jnp.mean((x - mu) ** 2, axis=-1, keepdims=True)
    return (x - mu) / jnp.sqrt(var + EPS) * g + b


def transformer_ref(x, params):
    for l in range(DEPTH):
        xn = _ln_ref(x, params["ln_g"][l], params["ln_b"][l])
        qkv = xn @ params["wqkv"][l]
        q, k, v = jnp.split(qkv, 3, axis=-1)
        q = q.reshape(B, N, HEADS, DIM_HEAD).transpose(0, 2, 1, 3)
        k = k.reshape(B, N, HEADS, DIM_HEAD).transpose(0, 2, 1, 3)
        v = v.reshape(B, N, HEADS, DIM_HEAD).transpose(0, 2, 1, 3)
        dots = jnp.einsum("bhnd,bhmd->bhnm", q, k) * SCALE
        attn = jax.nn.softmax(dots, axis=-1)
        out = jnp.einsum("bhnm,bhmd->bhnd", attn, v)
        out = out.transpose(0, 2, 1, 3).reshape(B, N, INNER)
        x = out @ params["wo"][l] + params["bo"][l] + x
        h = _gelu_exact(x @ params["w1"][l] + params["b1"][l])
        x = h @ params["w2"][l] + params["b2"][l] + x
    return _ln_ref(x, params["final_g"], params["final_b"])


if __name__ == "__main__":
    key = jax.random.PRNGKey(0)
    kx, kp_key = jax.random.split(key)
    x = jax.random.normal(kx, (B, N, D), jnp.float32)
    params = init_params(kp_key)
    kparams = prepare_kernel_params(params)   # one-time host-side prep

    y = transformer_forward(x, kparams)
    jax.block_until_ready(y)

    y_ref = transformer_ref(x, params)
    assert jnp.allclose(y, y_ref, atol=2e-3, rtol=2e-3), "mismatch vs JAX reference"
    print("KERNEL_OK")
</pallas_src>

<mosaic_0001>
module attributes {stable_mosaic.version = 11 : i64} {
  func.func @transformer_kernel(%arg0: memref<16x32xf32, #tpu.memory_space<vmem>>, %arg1: memref<16x16xf32, #tpu.memory_space<vmem>>, %arg2: memref<2x1x32xf32, #tpu.memory_space<vmem>>, %arg3: memref<2x1x32xf32, #tpu.memory_space<vmem>>, %arg4: memref<2x32x128xf32, #tpu.memory_space<vmem>>, %arg5: memref<2x32x128xf32, #tpu.memory_space<vmem>>, %arg6: memref<2x1x32xf32, #tpu.memory_space<vmem>>, %arg7: memref<2x32x64xf32, #tpu.memory_space<vmem>>, %arg8: memref<2x1x64xf32, #tpu.memory_space<vmem>>, %arg9: memref<2x64x32xf32, #tpu.memory_space<vmem>>, %arg10: memref<2x1x32xf32, #tpu.memory_space<vmem>>, %arg11: memref<1x32xf32, #tpu.memory_space<vmem>>, %arg12: memref<1x32xf32, #tpu.memory_space<vmem>>, %arg13: memref<16x32xf32, #tpu.memory_space<vmem>>, %arg14: memref<64x16xf32, #tpu.memory_space<vmem>>) attributes {dimension_semantics = [], scalar_prefetch = 0 : i64, scratch_operands = 1 : i64, tpu.core_type = #tpu.core_type<tc>} {
    %c0 = arith.constant 0 : index
    %c0_0 = arith.constant 0 : index
    %0 = vector.load %arg0[%c0, %c0_0] : memref<16x32xf32, #tpu.memory_space<vmem>>, vector<16x32xf32>
    %c0_1 = arith.constant 0 : index
    %c0_2 = arith.constant 0 : index
    %1 = vector.load %arg1[%c0_1, %c0_2] : memref<16x16xf32, #tpu.memory_space<vmem>>, vector<16x16xf32>
    %c0_3 = arith.constant 0 : index
    %c0_4 = arith.constant 0 : index
    %c0_5 = arith.constant 0 : index
    %2 = vector.load %arg2[%c0_3, %c0_4, %c0_5] : memref<2x1x32xf32, #tpu.memory_space<vmem>>, vector<1x1x32xf32>
    %3 = vector.shape_cast %2 : vector<1x1x32xf32> to vector<1x32xf32>
    %c0_6 = arith.constant 0 : index
    %c0_7 = arith.constant 0 : index
    %c0_8 = arith.constant 0 : index
    %4 = vector.load %arg3[%c0_6, %c0_7, %c0_8] : memref<2x1x32xf32, #tpu.memory_space<vmem>>, vector<1x1x32xf32>
    %5 = vector.shape_cast %4 : vector<1x1x32xf32> to vector<1x32xf32>
    %cst = arith.constant dense<0.000000e+00> : vector<16xf32>
    %6 = vector.multi_reduction <add>, %0, %cst [1] : vector<16x32xf32> to vector<16xf32>
    %7 = vector.shape_cast %6 : vector<16xf32> to vector<16x1xf32>
    %cst_9 = arith.constant 3.200000e+01 : f32
    %8 = vector.broadcast %cst_9 : f32 to vector<16x1xf32>
    %9 = arith.divf %7, %8 : vector<16x1xf32>
    %10 = vector.broadcast %9 : vector<16x1xf32> to vector<16x32xf32>
    %11 = arith.subf %0, %10 : vector<16x32xf32>
    %12 = arith.mulf %11, %11 : vector<16x32xf32>
    %cst_10 = arith.constant dense<0.000000e+00> : vector<16xf32>
    %13 = vector.multi_reduction <add>, %12, %cst_10 [1] : vector<16x32xf32> to vector<16xf32>
    %14 = vector.shape_cast %13 : vector<16xf32> to vector<16x1xf32>
    %cst_11 = arith.constant 3.200000e+01 : f32
    %15 = vector.broadcast %cst_11 : f32 to vector<16x1xf32>
    %16 = arith.divf %14, %15 : vector<16x1xf32>
    %17 = vector.broadcast %9 : vector<16x1xf32> to vector<16x32xf32>
    %18 = arith.subf %0, %17 : vector<16x32xf32>
    %cst_12 = arith.constant 9.99999974E-6 : f32
    %19 = vector.broadcast %cst_12 : f32 to vector<16x1xf32>
    %20 = arith.addf %16, %19 : vector<16x1xf32>
    %21 = math.rsqrt %20 : vector<16x1xf32>
    %22 = vector.broadcast %21 : vector<16x1xf32> to vector<16x32xf32>
    %23 = arith.mulf %18, %22 : vector<16x32xf32>
    %24 = vector.broadcast %3 : vector<1x32xf32> to vector<16x32xf32>
    %25 = arith.mulf %23, %24 : vector<16x32xf32>
    %26 = vector.broadcast %5 : vector<1x32xf32> to vector<16x32xf32>
    %27 = arith.addf %25, %26 : vector<16x32xf32>
    %c0_13 = arith.constant 0 : index
    %c0_14 = arith.constant 0 : index
    %c0_15 = arith.constant 0 : index
    %28 = vector.load %arg4[%c0_13, %c0_14, %c0_15] : memref<2x32x128xf32, #tpu.memory_space<vmem>>, vector<1x32x128xf32>
    %29 = vector.shape_cast %28 : vector<1x32x128xf32> to vector<32x128xf32>
    %cst_16 = arith.constant dense<0.000000e+00> : vector<16x128xf32>
    %30 = tpu.matmul %27, %29, %cst_16 {dimension_numbers = #tpu.dot_dimension_numbers<[1], [0], [0], [1], [0, 0, 1, 1], [], []>} : vector<16x32xf32>, vector<32x128xf32>, vector<16x128xf32> -> vector<16x128xf32>
    %c0_17 = arith.constant 0 : index
    %c0_18 = arith.constant 0 : index
    %c0_19 = arith.constant 0 : index
    %31 = vector.load %arg5[%c0_17, %c0_18, %c0_19] : memref<2x32x128xf32, #tpu.memory_space<vmem>>, vector<1x32x128xf32>
    %32 = vector.shape_cast %31 : vector<1x32x128xf32> to vector<32x128xf32>
    %cst_20 = arith.constant dense<0.000000e+00> : vector<16x128xf32>
    %33 = tpu.matmul %27, %32, %cst_20 {dimension_numbers = #tpu.dot_dimension_numbers<[1], [0], [0], [1], [0, 0, 1, 1], [], []>} : vector<16x32xf32>, vector<32x128xf32>, vector<16x128xf32> -> vector<16x128xf32>
    %34 = vector.extract_strided_slice %30 {offsets = [0, 0], sizes = [16, 32], strides = [1, 1]} : vector<16x128xf32> to vector<16x32xf32>
    %cst_21 = arith.constant dense<0.000000e+00> : vector<16x16xf32>
    %35 = tpu.matmul %34, %27, %cst_21 {dimension_numbers = #tpu.dot_dimension_numbers<[1], [1], [0], [0], [0, 0, 1, 0], [], []>} : vector<16x32xf32>, vector<16x32xf32>, vector<16x16xf32> -> vector<16x16xf32>
    %36 = arith.addf %35, %1 : vector<16x16xf32>
    %c0_22 = arith.constant 0 : index
    %c0_23 = arith.constant 0 : index
    %37 = vector.load %arg14[%c0_22, %c0_23] : memref<64x16xf32, #tpu.memory_space<vmem>>, vector<16x16xf32>
    tpu.vector_store %arg14[%c0_22, %c0_23], %36 {strides = array<i32>} : memref<64x16xf32, #tpu.memory_space<vmem>>, vector<16x16xf32>,
    %38 = vector.extract_strided_slice %30 {offsets = [0, 32], sizes = [16, 32], strides = [1, 1]} : vector<16x128xf32> to vector<16x32xf32>
    %cst_24 = arith.constant dense<0.000000e+00> : vector<16x16xf32>
    %39 = tpu.matmul %38, %27, %cst_24 {dimension_numbers = #tpu.dot_dimension_numbers<[1], [1], [0], [0], [0, 0, 1, 0], [], []>} : vector<16x32xf32>, vector<16x32xf32>, vector<16x16xf32> -> vector<16x16xf32>
    %40 = arith.addf %39, %1 : vector<16x16xf32>
    %c16 = arith.constant 16 : index
    %c0_25 = arith.constant 0 : index
    %41 = vector.load %arg14[%c16, %c0_25] : memref<64x16xf32, #tpu.memory_space<vmem>>, vector<16x16xf32>
    tpu.vector_store %arg14[%c16, %c0_25], %40 {strides = array<i32>} : memref<64x16xf32, #tpu.memory_space<vmem>>, vector<16x16xf32>,
    %42 = vector.extract_strided_slice %30 {offsets = [0, 64], sizes = [16, 32], strides = [1, 1]} : vector<16x128xf32> to vector<16x32xf32>
    %cst_26 = arith.constant dense<0.000000e+00> : vector<16x16xf32>
    %43 = tpu.matmul %42, %27, %cst_26 {dimension_numbers = #tpu.dot_dimension_numbers<[1], [1], [0], [0], [0, 0, 1, 0], [], []>} : vector<16x32xf32>, vector<16x32xf32>, vector<16x16xf32> -> vector<16x16xf32>
    %44 = arith.addf %43, %1 : vector<16x16xf32>
    %c32 = arith.constant 32 : index
    %c0_27 = arith.constant 0 : index
    %45 = vector.load %arg14[%c32, %c0_27] : memref<64x16xf32, #tpu.memory_space<vmem>>, vector<16x16xf32>
    tpu.vector_store %arg14[%c32, %c0_27], %44 {strides = array<i32>} : memref<64x16xf32, #tpu.memory_space<vmem>>, vector<16x16xf32>,
    %46 = vector.extract_strided_slice %30 {offsets = [0, 96], sizes = [16, 32], strides = [1, 1]} : vector<16x128xf32> to vector<16x32xf32>
    %cst_28 = arith.constant dense<0.000000e+00> : vector<16x16xf32>
    %47 = tpu.matmul %46, %27, %cst_28 {dimension_numbers = #tpu.dot_dimension_numbers<[1], [1], [0], [0], [0, 0, 1, 0], [], []>} : vector<16x32xf32>, vector<16x32xf32>, vector<16x16xf32> -> vector<16x16xf32>
    %48 = arith.addf %47, %1 : vector<16x16xf32>
    %c48 = arith.constant 48 : index
    %c0_29 = arith.constant 0 : index
    %49 = vector.load %arg14[%c48, %c0_29] : memref<64x16xf32, #tpu.memory_space<vmem>>, vector<16x16xf32>
    tpu.vector_store %arg14[%c48, %c0_29], %48 {strides = array<i32>} : memref<64x16xf32, #tpu.memory_space<vmem>>, vector<16x16xf32>,
    %c0_30 = arith.constant 0 : index
    %c0_31 = arith.constant 0 : index
    %50 = vector.load %arg14[%c0_30, %c0_31] : memref<64x16xf32, #tpu.memory_space<vmem>>, vector<64x16xf32>
    %cst_32 = arith.constant dense<0xFF800000> : vector<64xf32>
    %51 = vector.multi_reduction <maximumf>, %50, %cst_32 [1] : vector<64x16xf32> to vector<64xf32>
    %52 = vector.shape_cast %51 : vector<64xf32> to vector<64x1xf32>
    %53 = vector.broadcast %52 : vector<64x1xf32> to vector<64x16xf32>
    %54 = arith.subf %50, %53 : vector<64x16xf32>
    %55 = math.exp %54 : vector<64x16xf32>
    %cst_33 = arith.constant dense<0.000000e+00> : vector<64xf32>
    %56 = vector.multi_reduction <add>, %55, %cst_33 [1] : vector<64x16xf32> to vector<64xf32>
    %57 = vector.shape_cast %56 : vector<64xf32> to vector<64x1xf32>
    %58 = tpu.reciprocal %57 {approx = true} : vector<64x1xf32> -> vector<64x1xf32>
    %59 = vector.broadcast %58 : vector<64x1xf32> to vector<64x16xf32>
    %60 = arith.mulf %55, %59 : vector<64x16xf32>
    %cst_34 = arith.constant 0.000000e+00 : f32
    %61 = vector.broadcast %cst_34 : f32 to vector<16x32xf32>
    %62 = vector.extract_strided_slice %60 {offsets = [0, 0], sizes = [16, 16], strides = [1, 1]} : vector<64x16xf32> to vector<16x16xf32>
    %63 = vector.extract_strided_slice %33 {offsets = [0, 0], sizes = [16, 32], strides = [1, 1]} : vector<16x128xf32> to vector<16x32xf32>
    %cst_35 = arith.constant dense<0.000000e+00> : vector<16x32xf32>
    %64 = tpu.matmul %62, %63, %cst_35 {dimension_numbers = #tpu.dot_dimension_numbers<[1], [0], [0], [1], [0, 0, 1, 1], [], []>} : vector<16x16xf32>, vector<16x32xf32>, vector<16x32xf32> -> vector<16x32xf32>
    %65 = arith.addf %61, %64 : vector<16x32xf32>
    %66 = vector.extract_strided_slice %60 {offsets = [16, 0], sizes = [16, 16], strides = [1, 1]} : vector<64x16xf32> to vector<16x16xf32>
    %67 = vector.extract_strided_slice %33 {offsets = [0, 32], sizes = [16, 32], strides = [1, 1]} : vector<16x128xf32> to vector<16x32xf32>
    %cst_36 = arith.constant dense<0.000000e+00> : vector<16x32xf32>
    %68 = tpu.matmul %66, %67, %cst_36 {dimension_numbers = #tpu.dot_dimension_numbers<[1], [0], [0], [1], [0, 0, 1, 1], [], []>} : vector<16x16xf32>, vector<16x32xf32>, vector<16x32xf32> -> vector<16x32xf32>
    %69 = arith.addf %65, %68 : vector<16x32xf32>
    %70 = vector.extract_strided_slice %60 {offsets = [32, 0], sizes = [16, 16], strides = [1, 1]} : vector<64x16xf32> to vector<16x16xf32>
    %71 = vector.extract_strided_slice %33 {offsets = [0, 64], sizes = [16, 32], strides = [1, 1]} : vector<16x128xf32> to vector<16x32xf32>
    %cst_37 = arith.constant dense<0.000000e+00> : vector<16x32xf32>
    %72 = tpu.matmul %70, %71, %cst_37 {dimension_numbers = #tpu.dot_dimension_numbers<[1], [0], [0], [1], [0, 0, 1, 1], [], []>} : vector<16x16xf32>, vector<16x32xf32>, vector<16x32xf32> -> vector<16x32xf32>
    %73 = arith.addf %69, %72 : vector<16x32xf32>
    %74 = vector.extract_strided_slice %60 {offsets = [48, 0], sizes = [16, 16], strides = [1, 1]} : vector<64x16xf32> to vector<16x16xf32>
    %75 = vector.extract_strided_slice %33 {offsets = [0, 96], sizes = [16, 32], strides = [1, 1]} : vector<16x128xf32> to vector<16x32xf32>
    %cst_38 = arith.constant dense<0.000000e+00> : vector<16x32xf32>
    %76 = tpu.matmul %74, %75, %cst_38 {dimension_numbers = #tpu.dot_dimension_numbers<[1], [0], [0], [1], [0, 0, 1, 1], [], []>} : vector<16x16xf32>, vector<16x32xf32>, vector<16x32xf32> -> vector<16x32xf32>
    %77 = arith.addf %73, %76 : vector<16x32xf32>
    %78 = arith.addf %0, %77 : vector<16x32xf32>
    %c0_39 = arith.constant 0 : index
    %c0_40 = arith.constant 0 : index
    %c0_41 = arith.constant 0 : index
    %79 = vector.load %arg6[%c0_39, %c0_40, %c0_41] : memref<2x1x32xf32, #tpu.memory_space<vmem>>, vector<1x1x32xf32>
    %80 = vector.shape_cast %79 : vector<1x1x32xf32> to vector<1x32xf32>
    %81 = vector.broadcast %80 : vector<1x32xf32> to vector<16x32xf32>
    %82 = arith.addf %78, %81 : vector<16x32xf32>
    %c0_42 = arith.constant 0 : index
    %c0_43 = arith.constant 0 : index
    %c0_44 = arith.constant 0 : index
    %83 = vector.load %arg7[%c0_42, %c0_43, %c0_44] : memref<2x32x64xf32, #tpu.memory_space<vmem>>, vector<1x32x64xf32>
    %84 = vector.shape_cast %83 : vector<1x32x64xf32> to vector<32x64xf32>
    %cst_45 = arith.constant dense<0.000000e+00> : vector<16x64xf32>
    %85 = tpu.matmul %82, %84, %cst_45 {dimension_numbers = #tpu.dot_dimension_numbers<[1], [0], [0], [1], [0, 0, 1, 1], [], []>} : vector<16x32xf32>, vector<32x64xf32>, vector<16x64xf32> -> vector<16x64xf32>
    %c0_46 = arith.constant 0 : index
    %c0_47 = arith.constant 0 : index
    %c0_48 = arith.constant 0 : index
    %86 = vector.load %arg8[%c0_46, %c0_47, %c0_48] : memref<2x1x64xf32, #tpu.memory_space<vmem>>, vector<1x1x64xf32>
    %87 = vector.shape_cast %86 : vector<1x1x64xf32> to vector<1x64xf32>
    %88 = vector.broadcast %87 : vector<1x64xf32> to vector<16x64xf32>
    %89 = arith.addf %85, %88 : vector<16x64xf32>
    %cst_49 = arith.constant 5.000000e-01 : f32
    %90 = vector.broadcast %cst_49 : f32 to vector<16x64xf32>
    %91 = arith.mulf %90, %89 : vector<16x64xf32>
    %cst_50 = arith.constant 1.41421354 : f32
    %92 = vector.broadcast %cst_50 : f32 to vector<16x64xf32>
    %93 = arith.divf %89, %92 : vector<16x64xf32>
    %94 = math.erf %93 : vector<16x64xf32>
    %cst_51 = arith.constant 1.000000e+00 : f32
    %95 = vector.broadcast %cst_51 : f32 to vector<16x64xf32>
    %96 = arith.addf %95, %94 : vector<16x64xf32>
    %97 = arith.mulf %91, %96 : vector<16x64xf32>
    %c0_52 = arith.constant 0 : index
    %c0_53 = arith.constant 0 : index
    %c0_54 = arith.constant 0 : index
    %98 = vector.load %arg9[%c0_52, %c0_53, %c0_54] : memref<2x64x32xf32, #tpu.memory_space<vmem>>, vector<1x64x32xf32>
    %99 = vector.shape_cast %98 : vector<1x64x32xf32> to vector<64x32xf32>
    %cst_55 = arith.constant dense<0.000000e+00> : vector<16x32xf32>
    %100 = tpu.matmul %97, %99, %cst_55 {dimension_numbers = #tpu.dot_dimension_numbers<[1], [0], [0], [1], [0, 0, 1, 1], [], []>} : vector<16x64xf32>, vector<64x32xf32>, vector<16x32xf32> -> vector<16x32xf32>
    %101 = arith.addf %82, %100 : vector<16x32xf32>
    %c0_56 = arith.constant 0 : index
    %c0_57 = arith.constant 0 : index
    %c0_58 = arith.constant 0 : index
    %102 = vector.load %arg10[%c0_56, %c0_57, %c0_58] : memref<2x1x32xf32, #tpu.memory_space<vmem>>, vector<1x1x32xf32>
    %103 = vector.shape_cast %102 : vector<1x1x32xf32> to vector<1x32xf32>
    %104 = vector.broadcast %103 : vector<1x32xf32> to vector<16x32xf32>
    %105 = arith.addf %101, %104 : vector<16x32xf32>
    %c1 = arith.constant 1 : index
    %c0_59 = arith.constant 0 : index
    %c0_60 = arith.constant 0 : index
    %106 = vector.load %arg2[%c1, %c0_59, %c0_60] : memref<2x1x32xf32, #tpu.memory_space<vmem>>, vector<1x1x32xf32>
    %107 = vector.shape_cast %106 : vector<1x1x32xf32> to vector<1x32xf32>
    %c1_61 = arith.constant 1 : index
    %c0_62 = arith.constant 0 : index
    %c0_63 = arith.constant 0 : index
    %108 = vector.load %arg3[%c1_61, %c0_62, %c0_63] : memref<2x1x32xf32, #tpu.memory_space<vmem>>, vector<1x1x32xf32>
    %109 = vector.shape_cast %108 : vector<1x1x32xf32> to vector<1x32xf32>
    %cst_64 = arith.constant dense<0.000000e+00> : vector<16xf32>
    %110 = vector.multi_reduction <add>, %105, %cst_64 [1] : vector<16x32xf32> to vector<16xf32>
    %111 = vector.shape_cast %110 : vector<16xf32> to vector<16x1xf32>
    %cst_65 = arith.constant 3.200000e+01 : f32
    %112 = vector.broadcast %cst_65 : f32 to vector<16x1xf32>
    %113 = arith.divf %111, %112 : vector<16x1xf32>
    %114 = vector.broadcast %113 : vector<16x1xf32> to vector<16x32xf32>
    %115 = arith.subf %105, %114 : vector<16x32xf32>
    %116 = arith.mulf %115, %115 : vector<16x32xf32>
    %cst_66 = arith.constant dense<0.000000e+00> : vector<16xf32>
    %117 = vector.multi_reduction <add>, %116, %cst_66 [1] : vector<16x32xf32> to vector<16xf32>
    %118 = vector.shape_cast %117 : vector<16xf32> to vector<16x1xf32>
    %cst_67 = arith.constant 3.200000e+01 : f32
    %119 = vector.broadcast %cst_67 : f32 to vector<16x1xf32>
    %120 = arith.divf %118, %119 : vector<16x1xf32>
    %121 = vector.broadcast %113 : vector<16x1xf32> to vector<16x32xf32>
    %122 = arith.subf %105, %121 : vector<16x32xf32>
    %cst_68 = arith.constant 9.99999974E-6 : f32
    %123 = vector.broadcast %cst_68 : f32 to vector<16x1xf32>
    %124 = arith.addf %120, %123 : vector<16x1xf32>
    %125 = math.rsqrt %124 : vector<16x1xf32>
    %126 = vector.broadcast %125 : vector<16x1xf32> to vector<16x32xf32>
    %127 = arith.mulf %122, %126 : vector<16x32xf32>
    %128 = vector.broadcast %107 : vector<1x32xf32> to vector<16x32xf32>
    %129 = arith.mulf %127, %128 : vector<16x32xf32>
    %130 = vector.broadcast %109 : vector<1x32xf32> to vector<16x32xf32>
    %131 = arith.addf %129, %130 : vector<16x32xf32>
    %c1_69 = arith.constant 1 : index
    %c0_70 = arith.constant 0 : index
    %c0_71 = arith.constant 0 : index
    %132 = vector.load %arg4[%c1_69, %c0_70, %c0_71] : memref<2x32x128xf32, #tpu.memory_space<vmem>>, vector<1x32x128xf32>
    %133 = vector.shape_cast %132 : vector<1x32x128xf32> to vector<32x128xf32>
    %cst_72 = arith.constant dense<0.000000e+00> : vector<16x128xf32>
    %134 = tpu.matmul %131, %133, %cst_72 {dimension_numbers = #tpu.dot_dimension_numbers<[1], [0], [0], [1], [0, 0, 1, 1], [], []>} : vector<16x32xf32>, vector<32x128xf32>, vector<16x128xf32> -> vector<16x128xf32>
    %c1_73 = arith.constant 1 : index
    %c0_74 = arith.constant 0 : index
    %c0_75 = arith.constant 0 : index
    %135 = vector.load %arg5[%c1_73, %c0_74, %c0_75] : memref<2x32x128xf32, #tpu.memory_space<vmem>>, vector<1x32x128xf32>
    %136 = vector.shape_cast %135 : vector<1x32x128xf32> to vector<32x128xf32>
    %cst_76 = arith.constant dense<0.000000e+00> : vector<16x128xf32>
    %137 = tpu.matmul %131, %136, %cst_76 {dimension_numbers = #tpu.dot_dimension_numbers<[1], [0], [0], [1], [0, 0, 1, 1], [], []>} : vector<16x32xf32>, vector<32x128xf32>, vector<16x128xf32> -> vector<16x128xf32>
    %138 = vector.extract_strided_slice %134 {offsets = [0, 0], sizes = [16, 32], strides = [1, 1]} : vector<16x128xf32> to vector<16x32xf32>
    %cst_77 = arith.constant dense<0.000000e+00> : vector<16x16xf32>
    %139 = tpu.matmul %138, %131, %cst_77 {dimension_numbers = #tpu.dot_dimension_numbers<[1], [1], [0], [0], [0, 0, 1, 0], [], []>} : vector<16x32xf32>, vector<16x32xf32>, vector<16x16xf32> -> vector<16x16xf32>
    %140 = arith.addf %139, %1 : vector<16x16xf32>
    %c0_78 = arith.constant 0 : index
    %c0_79 = arith.constant 0 : index
    %141 = vector.load %arg14[%c0_78, %c0_79] : memref<64x16xf32, #tpu.memory_space<vmem>>, vector<16x16xf32>
    tpu.vector_store %arg14[%c0_78, %c0_79], %140 {strides = array<i32>} : memref<64x16xf32, #tpu.memory_space<vmem>>, vector<16x16xf32>,
    %142 = vector.extract_strided_slice %134 {offsets = [0, 32], sizes = [16, 32], strides = [1, 1]} : vector<16x128xf32> to vector<16x32xf32>
    %cst_80 = arith.constant dense<0.000000e+00> : vector<16x16xf32>
    %143 = tpu.matmul %142, %131, %cst_80 {dimension_numbers = #tpu.dot_dimension_numbers<[1], [1], [0], [0], [0, 0, 1, 0], [], []>} : vector<16x32xf32>, vector<16x32xf32>, vector<16x16xf32> -> vector<16x16xf32>
    %144 = arith.addf %143, %1 : vector<16x16xf32>
    %c16_81 = arith.constant 16 : index
    %c0_82 = arith.constant 0 : index
    %145 = vector.load %arg14[%c16_81, %c0_82] : memref<64x16xf32, #tpu.memory_space<vmem>>, vector<16x16xf32>
    tpu.vector_store %arg14[%c16_81, %c0_82], %144 {strides = array<i32>} : memref<64x16xf32, #tpu.memory_space<vmem>>, vector<16x16xf32>,
    %146 = vector.extract_strided_slice %134 {offsets = [0, 64], sizes = [16, 32], strides = [1, 1]} : vector<16x128xf32> to vector<16x32xf32>
    %cst_83 = arith.constant dense<0.000000e+00> : vector<16x16xf32>
    %147 = tpu.matmul %146, %131, %cst_83 {dimension_numbers = #tpu.dot_dimension_numbers<[1], [1], [0], [0], [0, 0, 1, 0], [], []>} : vector<16x32xf32>, vector<16x32xf32>, vector<16x16xf32> -> vector<16x16xf32>
    %148 = arith.addf %147, %1 : vector<16x16xf32>
    %c32_84 = arith.constant 32 : index
    %c0_85 = arith.constant 0 : index
    %149 = vector.load %arg14[%c32_84, %c0_85] : memref<64x16xf32, #tpu.memory_space<vmem>>, vector<16x16xf32>
    tpu.vector_store %arg14[%c32_84, %c0_85], %148 {strides = array<i32>} : memref<64x16xf32, #tpu.memory_space<vmem>>, vector<16x16xf32>,
    %150 = vector.extract_strided_slice %134 {offsets = [0, 96], sizes = [16, 32], strides = [1, 1]} : vector<16x128xf32> to vector<16x32xf32>
    %cst_86 = arith.constant dense<0.000000e+00> : vector<16x16xf32>
    %151 = tpu.matmul %150, %131, %cst_86 {dimension_numbers = #tpu.dot_dimension_numbers<[1], [1], [0], [0], [0, 0, 1, 0], [], []>} : vector<16x32xf32>, vector<16x32xf32>, vector<16x16xf32> -> vector<16x16xf32>
    %152 = arith.addf %151, %1 : vector<16x16xf32>
    %c48_87 = arith.constant 48 : index
    %c0_88 = arith.constant 0 : index
    %153 = vector.load %arg14[%c48_87, %c0_88] : memref<64x16xf32, #tpu.memory_space<vmem>>, vector<16x16xf32>
    tpu.vector_store %arg14[%c48_87, %c0_88], %152 {strides = array<i32>} : memref<64x16xf32, #tpu.memory_space<vmem>>, vector<16x16xf32>,
    %c0_89 = arith.constant 0 : index
    %c0_90 = arith.constant 0 : index
    %154 = vector.load %arg14[%c0_89, %c0_90] : memref<64x16xf32, #tpu.memory_space<vmem>>, vector<64x16xf32>
    %cst_91 = arith.constant dense<0xFF800000> : vector<64xf32>
    %155 = vector.multi_reduction <maximumf>, %154, %cst_91 [1] : vector<64x16xf32> to vector<64xf32>
    %156 = vector.shape_cast %155 : vector<64xf32> to vector<64x1xf32>
    %157 = vector.broadcast %156 : vector<64x1xf32> to vector<64x16xf32>
    %158 = arith.subf %154, %157 : vector<64x16xf32>
    %159 = math.exp %158 : vector<64x16xf32>
    %cst_92 = arith.constant dense<0.000000e+00> : vector<64xf32>
    %160 = vector.multi_reduction <add>, %159, %cst_92 [1] : vector<64x16xf32> to vector<64xf32>
    %161 = vector.shape_cast %160 : vector<64xf32> to vector<64x1xf32>
    %162 = tpu.reciprocal %161 {approx = true} : vector<64x1xf32> -> vector<64x1xf32>
    %163 = vector.broadcast %162 : vector<64x1xf32> to vector<64x16xf32>
    %164 = arith.mulf %159, %163 : vector<64x16xf32>
    %cst_93 = arith.constant 0.000000e+00 : f32
    %165 = vector.broadcast %cst_93 : f32 to vector<16x32xf32>
    %166 = vector.extract_strided_slice %164 {offsets = [0, 0], sizes = [16, 16], strides = [1, 1]} : vector<64x16xf32> to vector<16x16xf32>
    %167 = vector.extract_strided_slice %137 {offsets = [0, 0], sizes = [16, 32], strides = [1, 1]} : vector<16x128xf32> to vector<16x32xf32>
    %cst_94 = arith.constant dense<0.000000e+00> : vector<16x32xf32>
    %168 = tpu.matmul %166, %167, %cst_94 {dimension_numbers = #tpu.dot_dimension_numbers<[1], [0], [0], [1], [0, 0, 1, 1], [], []>} : vector<16x16xf32>, vector<16x32xf32>, vector<16x32xf32> -> vector<16x32xf32>
    %169 = arith.addf %165, %168 : vector<16x32xf32>
    %170 = vector.extract_strided_slice %164 {offsets = [16, 0], sizes = [16, 16], strides = [1, 1]} : vector<64x16xf32> to vector<16x16xf32>
    %171 = vector.extract_strided_slice %137 {offsets = [0, 32], sizes = [16, 32], strides = [1, 1]} : vector<16x128xf32> to vector<16x32xf32>
    %cst_95 = arith.constant dense<0.000000e+00> : vector<16x32xf32>
    %172 = tpu.matmul %170, %171, %cst_95 {dimension_numbers = #tpu.dot_dimension_numbers<[1], [0], [0], [1], [0, 0, 1, 1], [], []>} : vector<16x16xf32>, vector<16x32xf32>, vector<16x32xf32> -> vector<16x32xf32>
    %173 = arith.addf %169, %172 : vector<16x32xf32>
    %174 = vector.extract_strided_slice %164 {offsets = [32, 0], sizes = [16, 16], strides = [1, 1]} : vector<64x16xf32> to vector<16x16xf32>
    %175 = vector.extract_strided_slice %137 {offsets = [0, 64], sizes = [16, 32], strides = [1, 1]} : vector<16x128xf32> to vector<16x32xf32>
    %cst_96 = arith.constant dense<0.000000e+00> : vector<16x32xf32>
    %176 = tpu.matmul %174, %175, %cst_96 {dimension_numbers = #tpu.dot_dimension_numbers<[1], [0], [0], [1], [0, 0, 1, 1], [], []>} : vector<16x16xf32>, vector<16x32xf32>, vector<16x32xf32> -> vector<16x32xf32>
    %177 = arith.addf %173, %176 : vector<16x32xf32>
    %178 = vector.extract_strided_slice %164 {offsets = [48, 0], sizes = [16, 16], strides = [1, 1]} : vector<64x16xf32> to vector<16x16xf32>
    %179 = vector.extract_strided_slice %137 {offsets = [0, 96], sizes = [16, 32], strides = [1, 1]} : vector<16x128xf32> to vector<16x32xf32>
    %cst_97 = arith.constant dense<0.000000e+00> : vector<16x32xf32>
    %180 = tpu.matmul %178, %179, %cst_97 {dimension_numbers = #tpu.dot_dimension_numbers<[1], [0], [0], [1], [0, 0, 1, 1], [], []>} : vector<16x16xf32>, vector<16x32xf32>, vector<16x32xf32> -> vector<16x32xf32>
    %181 = arith.addf %177, %180 : vector<16x32xf32>
    %182 = arith.addf %105, %181 : vector<16x32xf32>
    %c1_98 = arith.constant 1 : index
    %c0_99 = arith.constant 0 : index
    %c0_100 = arith.constant 0 : index
    %183 = vector.load %arg6[%c1_98, %c0_99, %c0_100] : memref<2x1x32xf32, #tpu.memory_space<vmem>>, vector<1x1x32xf32>
    %184 = vector.shape_cast %183 : vector<1x1x32xf32> to vector<1x32xf32>
    %185 = vector.broadcast %184 : vector<1x32xf32> to vector<16x32xf32>
    %186 = arith.addf %182, %185 : vector<16x32xf32>
    %c1_101 = arith.constant 1 : index
    %c0_102 = arith.constant 0 : index
    %c0_103 = arith.constant 0 : index
    %187 = vector.load %arg7[%c1_101, %c0_102, %c0_103] : memref<2x32x64xf32, #tpu.memory_space<vmem>>, vector<1x32x64xf32>
    %188 = vector.shape_cast %187 : vector<1x32x64xf32> to vector<32x64xf32>
    %cst_104 = arith.constant dense<0.000000e+00> : vector<16x64xf32>
    %189 = tpu.matmul %186, %188, %cst_104 {dimension_numbers = #tpu.dot_dimension_numbers<[1], [0], [0], [1], [0, 0, 1, 1], [], []>} : vector<16x32xf32>, vector<32x64xf32>, vector<16x64xf32> -> vector<16x64xf32>
    %c1_105 = arith.constant 1 : index
    %c0_106 = arith.constant 0 : index
    %c0_107 = arith.constant 0 : index
    %190 = vector.load %arg8[%c1_105, %c0_106, %c0_107] : memref<2x1x64xf32, #tpu.memory_space<vmem>>, vector<1x1x64xf32>
    %191 = vector.shape_cast %190 : vector<1x1x64xf32> to vector<1x64xf32>
    %192 = vector.broadcast %191 : vector<1x64xf32> to vector<16x64xf32>
    %193 = arith.addf %189, %192 : vector<16x64xf32>
    %cst_108 = arith.constant 5.000000e-01 : f32
    %194 = vector.broadcast %cst_108 : f32 to vector<16x64xf32>
    %195 = arith.mulf %194, %193 : vector<16x64xf32>
    %cst_109 = arith.constant 1.41421354 : f32
    %196 = vector.broadcast %cst_109 : f32 to vector<16x64xf32>
    %197 = arith.divf %193, %196 : vector<16x64xf32>
    %198 = math.erf %197 : vector<16x64xf32>
    %cst_110 = arith.constant 1.000000e+00 : f32
    %199 = vector.broadcast %cst_110 : f32 to vector<16x64xf32>
    %200 = arith.addf %199, %198 : vector<16x64xf32>
    %201 = arith.mulf %195, %200 : vector<16x64xf32>
    %c1_111 = arith.constant 1 : index
    %c0_112 = arith.constant 0 : index
    %c0_113 = arith.constant 0 : index
    %202 = vector.load %arg9[%c1_111, %c0_112, %c0_113] : memref<2x64x32xf32, #tpu.memory_space<vmem>>, vector<1x64x32xf32>
    %203 = vector.shape_cast %202 : vector<1x64x32xf32> to vector<64x32xf32>
    %cst_114 = arith.constant dense<0.000000e+00> : vector<16x32xf32>
    %204 = tpu.matmul %201, %203, %cst_114 {dimension_numbers = #tpu.dot_dimension_numbers<[1], [0], [0], [1], [0, 0, 1, 1], [], []>} : vector<16x64xf32>, vector<64x32xf32>, vector<16x32xf32> -> vector<16x32xf32>
    %205 = arith.addf %186, %204 : vector<16x32xf32>
    %c1_115 = arith.constant 1 : index
    %c0_116 = arith.constant 0 : index
    %c0_117 = arith.constant 0 : index
    %206 = vector.load %arg10[%c1_115, %c0_116, %c0_117] : memref<2x1x32xf32, #tpu.memory_space<vmem>>, vector<1x1x32xf32>
    %207 = vector.shape_cast %206 : vector<1x1x32xf32> to vector<1x32xf32>
    %208 = vector.broadcast %207 : vector<1x32xf32> to vector<16x32xf32>
    %209 = arith.addf %205, %208 : vector<16x32xf32>
    %c0_118 = arith.constant 0 : index
    %c0_119 = arith.constant 0 : index
    %210 = vector.load %arg11[%c0_118, %c0_119] : memref<1x32xf32, #tpu.memory_space<vmem>>, vector<1x32xf32>
    %c0_120 = arith.constant 0 : index
    %c0_121 = arith.constant 0 : index
    %211 = vector.load %arg12[%c0_120, %c0_121] : memref<1x32xf32, #tpu.memory_space<vmem>>, vector<1x32xf32>
    %cst_122 = arith.constant dense<0.000000e+00> : vector<16xf32>
    %212 = vector.multi_reduction <add>, %209, %cst_122 [1] : vector<16x32xf32> to vector<16xf32>
    %213 = vector.shape_cast %212 : vector<16xf32> to vector<16x1xf32>
    %cst_123 = arith.constant 3.200000e+01 : f32
    %214 = vector.broadcast %cst_123 : f32 to vector<16x1xf32>
    %215 = arith.divf %213, %214 : vector<16x1xf32>
    %216 = vector.broadcast %215 : vector<16x1xf32> to vector<16x32xf32>
    %217 = arith.subf %209, %216 : vector<16x32xf32>
    %218 = arith.mulf %217, %217 : vector<16x32xf32>
    %cst_124 = arith.constant dense<0.000000e+00> : vector<16xf32>
    %219 = vector.multi_reduction <add>, %218, %cst_124 [1] : vector<16x32xf32> to vector<16xf32>
    %220 = vector.shape_cast %219 : vector<16xf32> to vector<16x1xf32>
    %cst_125 = arith.constant 3.200000e+01 : f32
    %221 = vector.broadcast %cst_125 : f32 to vector<16x1xf32>
    %222 = arith.divf %220, %221 : vector<16x1xf32>
    %223 = vector.broadcast %215 : vector<16x1xf32> to vector<16x32xf32>
    %224 = arith.subf %209, %223 : vector<16x32xf32>
    %cst_126 = arith.constant 9.99999974E-6 : f32
    %225 = vector.broadcast %cst_126 : f32 to vector<16x1xf32>
    %226 = arith.addf %222, %225 : vector<16x1xf32>
    %227 = math.rsqrt %226 : vector<16x1xf32>
    %228 = vector.broadcast %227 : vector<16x1xf32> to vector<16x32xf32>
    %229 = arith.mulf %224, %228 : vector<16x32xf32>
    %230 = vector.broadcast %210 : vector<1x32xf32> to vector<16x32xf32>
    %231 = arith.mulf %229, %230 : vector<16x32xf32>
    %232 = vector.broadcast %211 : vector<1x32xf32> to vector<16x32xf32>
    %233 = arith.addf %231, %232 : vector<16x32xf32>
    %c0_127 = arith.constant 0 : index
    %c0_128 = arith.constant 0 : index
    %234 = vector.load %arg13[%c0_127, %c0_128] : memref<16x32xf32, #tpu.memory_space<vmem>>, vector<16x32xf32>
    tpu.vector_store %arg13[%c0_127, %c0_128], %233 {strides = array<i32>} : memref<16x32xf32, #tpu.memory_space<vmem>>, vector<16x32xf32>,
    return
  }
}

</mosaic_0001>

<bundles_post_ra>
// kernel: tpu_custom_call.1
= control target key start
LH: loop header
LB: loop body
LE: loop exit
PB: predicated region body
PF: predicated region fallthrough
CT: control target
= control target key end

     0   :  { %18 = vsyncpa [#allocation4], 0  ;;  %s3911_s0 = inlined_call_operand.hbm [shape: f32[16,32], index: 0, kind: input, shape index: {}]   ;;  %s3912_s1 = inlined_call_operand.hbm [shape: f32[16,16], index: 1, kind: input, shape index: {}]   ;;  %s3913_s2 = inlined_call_operand.vmem [shape: f32[2,1,32], index: 2, kind: input, shape index: {}]   ;;  %s3914_s3 = inlined_call_operand.vmem [shape: f32[2,1,32], index: 3, kind: input, shape index: {}]   ;;  %s3915_s4 = inlined_call_operand.vmem [shape: f32[2,32,128], index: 4, kind: input, shape index: {}]   ;;  %s3916_s5 = inlined_call_operand.vmem [shape: f32[2,32,128], index: 5, kind: input, shape index: {}]   ;;  %s3917_s6 = inlined_call_operand.vmem [shape: f32[2,1,32], index: 6, kind: input, shape index: {}]   ;;  %s3918_s7 = inlined_call_operand.vmem [shape: f32[2,32,64], index: 7, kind: input, shape index: {}]   ;;  %s3919_s8 = inlined_call_operand.vmem [shape: f32[2,1,64], index: 8, kind: input, shape index: {}]   ;;  %s3920_s9 = inlined_call_operand.vmem [shape: f32[2,64,32], index: 9, kind: input, shape index: {}]   ;;  %s3921_s10 = inlined_call_operand.vmem [shape: f32[2,1,32], index: 10, kind: input, shape index: {}]   ;;  %s3922_s11 = inlined_call_operand.vmem [shape: f32[1,32], index: 11, kind: input, shape index: {}]   ;;  %s3923_s12 = inlined_call_operand.vmem [shape: f32[1,32], index: 12, kind: input, shape index: {}]   ;;  %s3924_s13 = inlined_call_operand.hbm [shape: f32[16,32], index: 13, kind: output, shape index: {}]  }
   0x1   :  { %19 = vsyncpa [#allocation7], 0 }
   0x2   :  { %20 = vsyncpa [#allocation5], 0  ;;  %s3364_s25 = smov [#allocation3]   ;;  %s3292_s29 = scalar_lea.hbm %s3911_s0, 256 }
   0x3   :  { %s26_s26 = sshll.u32 %s3364_s25, 4  ;;  %p3293_p0 = scmp.ne.s32.totalorder %s3911_s0, %s3292_s29  ;;  %s27_s26 = int_to_ptr.vmem [resolvable:$true] %s26_s26 }
   0x4   :  { %p3296_p1 = scmp.lt.u32.totalorder %s3292_s29, %s3911_s0 }
   0x6   :  { %p3298_p2 = pnand %p3296_p1, %p3293_p0 }
   0x8   :  { %3301 = shalt.err (!%p3298_p2)
}
   0x9   :  { %s3302_s17 = scalar_lea.vmem %s27_s26, 256  ;;  %p3307_p4 = scmp.lt.s32.totalorder %s27_s26, %s27_s26 }
   0xa   :  { %p3303_p3 = scmp.ne.s32.totalorder %s27_s26, %s3302_s17  ;;  %p3308_p5 = scmp.lt.s32.totalorder %s3302_s17, %s3302_s17 }
   0xc   :  { %p3309_p6 = por %p3308_p5, %p3307_p4 }
   0xe   :  { %p3310_p7 = pnand %p3309_p6, %p3303_p3 }
  0x10   :  { %3313 = shalt.err (!%p3310_p7)
}
  0x11   :  { %s3365_s18 = smov 128   ;;  %s3366_s19 = smov 8  }
  0x12   :  { %32 = dma.hbm_to_vmem [thread:$0]  %s3911_s0, 256, %s27_s26, [#allocation4], %s3365_s18, %s3365_s18, %s3366_s19  }
  0x13   :  { %s3367_s22 = smov [#allocation6]   ;;  %s3314_s27 = scalar_lea.hbm %s3912_s1, 256 }
  0x14   :  { %s38_s23 = sshll.u32 %s3367_s22, 4  ;;  %p3315_p8 = scmp.ne.s32.totalorder %s3912_s1, %s3314_s27  ;;  %s39_s23 = int_to_ptr.vmem [resolvable:$true] %s38_s23 }
  0x15   :  { %p3318_p9 = scmp.lt.u32.totalorder %s3314_s27, %s3912_s1 }
  0x17   :  { %p3320_p10 = pnand %p3318_p9, %p3315_p8 }
  0x19   :  { %3323 = shalt.err (!%p3320_p10)
}
  0x1a   :  { %s3324_s15 = scalar_lea.vmem %s39_s23, 256  ;;  %p3329_p12 = scmp.lt.s32.totalorder %s39_s23, %s39_s23 }
  0x1b   :  { %p3325_p11 = scmp.ne.s32.totalorder %s39_s23, %s3324_s15  ;;  %p3330_p13 = scmp.lt.s32.totalorder %s3324_s15, %s3324_s15 }
  0x1d   :  { %p3331_p0 = por %p3330_p13, %p3329_p12 }
  0x1f   :  { %p3332_p1 = pnand %p3331_p0, %p3325_p11 }
  0x21   :  { %3335 = shalt.err (!%p3332_p1)
}
  0x22   :  { %44 = dma.hbm_to_vmem [thread:$0]  %s3912_s1, 256, %s39_s23, [#allocation7], %s3365_s18, %s3365_s18, %s3366_s19  }
  0x23   :  { %3358 = dma.done.wait [#allocation4], 256  }
  0x24   :  { %3359 = vsyncadd [#allocation4], 4294967040 }
  0x25   :  { %3360 = dma.done.wait [#allocation7], 256  }
  0x26   :  { %3361 = vsyncadd [#allocation7], 4294967040  ;;  %vm79_vm0 = vcmask 261120   ;;  %v3472_v0 = vld [vmem:[#allocation3] sm:$0xff]  ;;  %v3474_v1 = vld [vmem:[#allocation3 + $0x8] sm:$0xff]  ;;  %s3368_s20 = smov 96  }
  0x27   :  { %v80_v2 = vsel %vm79_vm0, %v3472_v0, 0.0  ;;  %v83_v3 = vsel %vm79_vm0, %v3474_v1, 0.0  ;;  %v123_v14 = vld [vmem:[%s3915_s4] sm:$0xff]  ;;  %v124_v15 = vld [vmem:[%s3915_s4 + $0x8] sm:$0xff]  ;;  %v125_v16 = vld [vmem:[%s3915_s4 + $0x10] sm:$0xff]  ;;  %s3369_s21 = smov 64  }
  0x28   :  { %81 = vadd.xlane.f32.xlu0 %v80_v2  ;;  %v2998_v17 = vpack.c.bf16 %v124_v15, %v123_v14  ;;  %v126_v18 = vld [vmem:[%s3915_s4 + $0x18] sm:$0xff]  ;;  %v208_v20 = vld [vmem:[%s3916_s5] sm:$0xff]  ;;  %v209_v21 = vld [vmem:[%s3916_s5 + $0x8] sm:$0xff]  ;;  %s3370_s22 = smov 32   ;;  %vm368_vm2 = vcmask 130048   ;;  %vm1192_vm3 = vcmask 523264  }
  0x29   :  { %v3002_v19 = vpack.c.bf16 %v126_v18, %v125_v16  ;;  %v3006_v22 = vpack.c.bf16 %v209_v21, %v208_v20  ;;  %v2561_v30 = vld [vmem:[%s3913_s2] ss:$0 sm:$0xff]  ;;  %v210_v37 = vld [vmem:[%s3916_s5 + $0x10] sm:$0xff]  ;;  %v211_v38 = vld [vmem:[%s3916_s5 + $0x18] sm:$0xff]  ;;  %s3371_s0 = smov [#allocation8]  }
  0x2a   :  { %2999 = vmatprep.subr.bf16.mxu1 %v2998_v17  ;;  %v2562_v32 = vld [vmem:[%s3914_s3] ss:$0 sm:$0xff]  ;;  %v3010_v41 = vpack.c.bf16 %v211_v38, %v210_v37  ;;  %vm3517_vm1 = vmpackc.low %vm79_vm0, %vm79_vm0  ;;  %v3558_v56 = vld [vmem:[#allocation6 + $0x8] sm:$0xff]  ;;  %s2548_s26 = sshll.u32 %s3371_s0, 4  ;;  %s2549_s26 = int_to_ptr.vmem [resolvable:$true] %s2548_s26 }
  0x2b   :  { %3001 = vmatpush3.bf16.msra.mxu1 %v2998_v17  ;;  %v3560_v57 = vld [vmem:[#allocation6] sm:$0xff]  ;;  %p3341_p3 = scmp.lt.s32.totalorder %s2549_s26, %s2549_s26 }
  0x2c   :  { %84 = vadd.xlane.f32.xlu0 %v83_v3  ;;  %3003 = vmatprep.subr.bf16.mxu1 %v3002_v19 }
  0x2f   :  { %3005 = vmatpush3.bf16.msra.mxu1 %v3002_v19 }
  0x30   :  { %3007 = vmatprep.subr.bf16.mxu1 %v3006_v22 }
  0xb5   :  { %v82_v4 = vpop.xlane.xlu0 %81 }
  0xb6   :  { %v87_v5 = vmul.f32 0.03125, %v82_v4 }
  0xb8   :  { %v89_v6 = vsub.f32 %v3472_v0, %v87_v5 }
  0xb9   :  { %v85_v7 = vpop.xlane.xlu0 %84 }
  0xba   :  { %v88_v8 = vmul.f32 0.03125, %v85_v7  ;;  %v91_v9 = vmul.f32 %v89_v6, %v89_v6 }
  0xbc   :  { %v90_v10 = vsub.f32 %v3474_v1, %v88_v8  ;;  %v93_v11 = vsel %vm79_vm0, %v91_v9, 0.0 }
  0xbd   :  { %94 = vadd.xlane.f32.xlu1 %v93_v11 }
  0xbe   :  { %v92_v12 = vmul.f32 %v90_v10, %v90_v10 }
  0xc0   :  { %v96_v13 = vsel %vm79_vm0, %v92_v12, 0.0 }
  0xc1   :  { %97 = vadd.xlane.f32.xlu1 %v96_v13 }
 0x14a   :  { %v95_v23 = vpop.xlane.xlu1 %94 }
 0x14b   :  { %v99_v24 = vmul.f32 0.03125, %v95_v23 }
 0x14d   :  { %v101_v25 = vadd.f32 1e-05, %v99_v24 }
 0x14e   :  { %v98_v26 = vpop.xlane.xlu1 %97 }
 0x14f   :  { %3208 = vrsqrt.f32 %v101_v25  ;;  %v100_v27 = vmul.f32 0.03125, %v98_v26 }
 0x151   :  { %v102_v28 = vadd.f32 1e-05, %v100_v27 }
 0x153   :  { %3210 = vrsqrt.f32 %v102_v28 }
 0x159   :  { %v3209_v29 = vpop.eup %3208 }
 0x15a   :  { %v105_v31 = vmul.f32 %v3209_v29, %v89_v6 }
 0x15c   :  { %v113_v33 = vmul.f32 %v2561_v30, %v105_v31 }
 0x15d   :  { %v3211_v34 = vpop.eup %3210 }
 0x15e   :  { %v106_v35 = vmul.f32 %v3211_v34, %v90_v10  ;;  %v121_v36 = vadd.f32 %v2562_v32, %v113_v33 }
 0x160   :  { %v114_v39 = vmul.f32 %v2561_v30, %v106_v35  ;;  %2790 = vmatprep.mubr.msk.f32.mxu1 %vm79_vm0, %v121_v36 }
 0x162   :  { %v122_v40 = vadd.f32 %v2562_v32, %v114_v39 }
 0x164   :  { %v3014_v43 = vpack.c.bf16 %v122_v40, %v121_v36  ;;  %2791 = vmatmul.mubr.msk.f32.vlgmr.msra.gmra.mrb[0].mxu1 %vm79_vm0, %v122_v40 }
 0x165   :  { %3009 = vmatpush3.bf16.msra.mxu1 %v3006_v22  ;;  %2801 = vmatprep.mubr.msk.f32.mxu1 %vm79_vm0, %v121_v36 }
 0x166   :  { %3016 = vmatprep.subr.msk.bf16.mxu0 %vm3517_vm1, %v3014_v43  ;;  %3011 = vmatprep.subr.bf16.mxu1 %v3010_v41 }
 0x167   :  { %3019 = vmatpush3.bf16.xpose.msk.msra.mxu0 %vm3517_vm1, %v3014_v43 }
 0x168   :  { %3028 = vmatprep.subr.msk.bf16.mxu0 %vm3517_vm1, %v3014_v43 }
 0x169   :  { %3013 = vmatpush3.bf16.msra.mxu1 %v3010_v41 }
 0x16a   :  { %3022 = vmatprep.subr.msk.bf16.mxu1 %vm3517_vm1, %v3014_v43 }
 0x16c   :  { %2802 = vmatmul.mubr.msk.f32.vlgmr.msra.gmra.mrb[2].mxu1 %vm79_vm0, %v122_v40 }
 0x172   :  { %3025 = vmatpush3.bf16.xpose.msk.msra.mxu1 %vm3517_vm1, %v3014_v43 }
 0x173   :  { %3034 = vmatprep.subr.msk.bf16.mxu1 %vm3517_vm1, %v3014_v43 }
 0x237   :  { %v2792_v44 = vpop.f32.mrb[0].mxu1 }
 0x238   :  { %373 = vrot.lane.b32.xlu1 %v2792_v44, %s3368_s20  ;;  %v199_v45 = vpop.f32.mrb[1].mxu1 }
 0x239   :  { %371 = vrot.lane.b32.xlu0 %v199_v45, %s3368_s20  ;;  %2808 = vmatprep.mubr.msk.f32.mxu0 %vm79_vm0, %v199_v45 }
 0x23a   :  { %2809 = vmatmul.mubr.msk.f32.vlgmr.msra.gmra.mrb[0].mxu0 %vm79_vm0, %v2792_v44 }
 0x23b   :  { %3031 = vmatpush3.bf16.xpose.msk.msra.mxu0 %vm3517_vm1, %v3014_v43 }
 0x23c   :  { %456 = vrot.lane.b32.xlu1 %v199_v45, %s3369_s21 }
 0x23d   :  { %541 = vrot.lane.b32.xlu0 %v199_v45, %s3370_s22 }
 0x23f   :  { %v2803_v46 = vpop.f32.mrb[2].mxu1 }
 0x240   :  { %v278_v47 = vpop.f32.mrb[3].mxu1  ;;  %458 = vrot.lane.b32.xlu1 %v2792_v44, %s3369_s21 }
 0x241   :  { %v3545_v48 = vpack.i.bf16 %v2803_v46, %v278_v47  ;;  %v3547_v49 = vpack.c.bf16 %v2803_v46, %v278_v47 }
 0x244   :  { %543 = vrot.lane.b32.xlu1 %v2792_v44, %s3370_s22 }
 0x2aa   :  { %v374_v50 = vpop.permute.xlu1 %373 }
 0x2ab   :  { %v372_v51 = vpop.permute.xlu0 %371 }
 0x2ac   :  { %2815 = vmatprep.mubr.msk.f32.mxu1 %vm79_vm0, %v372_v51 }
 0x2ad   :  { %2816 = vmatmul.mubr.msk.f32.vlgmr.msra.gmra.mrb[4].mxu1 %vm79_vm0, %v374_v50 }
 0x2ae   :  { %3037 = vmatpush3.bf16.xpose.msk.msra.mxu1 %vm3517_vm1, %v3014_v43  ;;  %v457_v52 = vpop.permute.xlu1 %456 }
 0x2af   :  { %v542_v53 = vpop.permute.xlu0 %541  ;;  %2822 = vmatprep.mubr.msk.f32.mxu0 %vm79_vm0, %v457_v52 }
 0x2b0   :  { %2829 = vmatprep.mubr.msk.f32.mxu1 %vm79_vm0, %v542_v53 }
 0x2b2   :  { %v459_v54 = vpop.permute.xlu1 %458 }
 0x2b3   :  { %2823 = vmatmul.mubr.msk.f32.vlgmr.msra.gmra.mrb[2].mxu0 %vm79_vm0, %v459_v54 }
 0x2b6   :  { %v544_v55 = vpop.permute.xlu1 %543 }
 0x2b7   :  { %2830 = vmatmul.mubr.msk.f32.vlgmr.msra.gmra.mrb[6].mxu1 %vm79_vm0, %v544_v55 }
 0x30d   :  { %v2810_v58 = vpop.f32.mrb[0].mxu0 }
 0x30e   :  { %v365_v59 = vadd.f32 %v2810_v58, %v3558_v56  ;;  %v359_v60 = vpop.f32.mrb[1].mxu0 }
 0x30f   :  { %v360_v61 = vadd.f32 %v359_v60, %v3560_v57 }
 0x310   :  { %370 = vst.msk [vmem:[#allocation2 + $0x8] sm:$0xff] %vm368_vm2, %v365_v59 }
 0x311   :  { %369 = vst.msk [vmem:[#allocation2] sm:$0xff] %vm368_vm2, %v360_v61 }
 0x317   :  { %v627_v20 = vld [vmem:[#allocation2 + $0x8] sm:$0xff] }
 0x318   :  { %v626_v16 = vld [vmem:[#allocation2] sm:$0xff]  ;;  %v637_v21 = vsel %vm368_vm2, %v627_v20, -inf }
 0x319   :  { %v634_v17 = vsel %vm368_vm2, %v626_v16, -inf }
 0x380   :  { %v2817_v62 = vpop.f32.mrb[4].mxu1 }
 0x381   :  { %v451_v63 = vadd.f32 %v2817_v62, %v3558_v56  ;;  %v445_v2 = vpop.f32.mrb[5].mxu1 }
 0x382   :  { %v446_v3 = vadd.f32 %v445_v2, %v3560_v57 }
 0x383   :  { %455 = vst.msk [vmem:[#allocation2 + $0x18] sm:$0xff] %vm368_vm2, %v451_v63 }
 0x384   :  { %454 = vst.msk [vmem:[#allocation2 + $0x10] sm:$0xff] %vm368_vm2, %v446_v3 }
 0x386   :  { %v2824_v4 = vpop.f32.mrb[2].mxu0 }
 0x387   :  { %v536_v5 = vadd.f32 %v2824_v4, %v3558_v56  ;;  %v530_v6 = vpop.f32.mrb[3].mxu0 }
 0x388   :  { %v531_v7 = vadd.f32 %v530_v6, %v3560_v57 }
 0x389   :  { %540 = vst.msk [vmem:[#allocation2 + $0x28] sm:$0xff] %vm368_vm2, %v536_v5 }
 0x38a   :  { %539 = vst.msk [vmem:[#allocation2 + $0x20] sm:$0xff] %vm368_vm2, %v531_v7  ;;  %v2831_v8 = vpop.f32.mrb[6].mxu1  ;;  %v629_v9 = vld [vmem:[#allocation2 + $0x18] sm:$0xff] }
 0x38b   :  { %v621_v10 = vadd.f32 %v2831_v8, %v3558_v56  ;;  %v615_v11 = vpop.f32.mrb[7].mxu1  ;;  %v643_v12 = vsel %vm368_vm2, %v629_v9, -inf  ;;  %v628_v13 = vld [vmem:[#allocation2 + $0x10] sm:$0xff] }
 0x38c   :  { %v616_v14 = vadd.f32 %v615_v11, %v3560_v57  ;;  %644 = vmax.xlane.f32.xlu1 %v643_v12  ;;  %v640_v15 = vsel %vm368_vm2, %v628_v13, -inf  ;;  %v1081_v11 = vld [vmem:[%s3918_s7] sm:$0xff]  ;;  %v1082_v12 = vld [vmem:[%s3918_s7 + $0x8] sm:$0xff] }
 0x38d   :  { %625 = vst.msk [vmem:[#allocation2 + $0x38] sm:$0xff] %vm368_vm2, %v621_v10  ;;  %641 = vmax.xlane.f32.xlu0 %v640_v15 }
 0x38e   :  { %624 = vst.msk [vmem:[#allocation2 + $0x30] sm:$0xff] %vm368_vm2, %v616_v14 }
 0x390   :  { %v631_v18 = vld [vmem:[#allocation2 + $0x28] sm:$0xff] }
 0x391   :  { %635 = vmax.xlane.f32.xlu0 %v634_v17  ;;  %v649_v19 = vsel %vm368_vm2, %v631_v18, -inf  ;;  %v630_v24 = vld [vmem:[#allocation2 + $0x20] sm:$0xff] }
 0x392   :  { %650 = vmax.xlane.f32.xlu1 %v649_v19  ;;  %v646_v25 = vsel %vm368_vm2, %v630_v24, -inf }
 0x394   :  { %v633_v22 = vld [vmem:[#allocation2 + $0x38] sm:$0xff] }
 0x395   :  { %638 = vmax.xlane.f32.xlu0 %v637_v21  ;;  %v655_v23 = vsel %vm368_vm2, %v633_v22, -inf  ;;  %v632_v26 = vld [vmem:[#allocation2 + $0x30] sm:$0xff] }
 0x396   :  { %656 = vmax.xlane.f32.xlu1 %v655_v23  ;;  %v652_v27 = vsel %vm368_vm2, %v632_v26, -inf }
 0x399   :  { %647 = vmax.xlane.f32.xlu0 %v646_v25 }
 0x39d   :  { %653 = vmax.xlane.f32.xlu0 %v652_v27 }
 0x419   :  { %v645_v29 = vpop.xlane.xlu1 %644 }
 0x41a   :  { %v642_v28 = vpop.xlane.xlu0 %641  ;;  %v661_v34 = vsub.f32 %v629_v9, %v645_v29 }
 0x41b   :  { %v660_v30 = vsub.f32 %v628_v13, %v642_v28  ;;  %v3054_v13 = vpack.c.bf16 %v1082_v12, %v1081_v11  ;;  %v2592_v11 = vld [vmem:[%s3919_s8] ss:$0 sm:$0xff] }
 0x41c   :  { %v672_v39 = vmul.f32 1.442695, %v661_v34 }
 0x41d   :  { %v670_v35 = vmul.f32 1.442695, %v660_v30  ;;  %3055 = vmatprep.subr.bf16.mxu1 %v3054_v13 }
 0x41e   :  { %v636_v31 = vpop.xlane.xlu0 %635  ;;  %3057 = vmatpush3.bf16.msra.mxu1 %v3054_v13 }
 0x41f   :  { %v658_v32 = vsub.f32 %v626_v16, %v636_v31  ;;  %v651_v33 = vpop.xlane.xlu1 %650 }
 0x420   :  { %v663_v40 = vsub.f32 %v631_v18, %v651_v33 }
 0x421   :  { %v666_v36 = vmul.f32 1.442695, %v658_v32 }
 0x422   :  { %v639_v37 = vpop.xlane.xlu0 %638  ;;  %v676_v45 = vmul.f32 1.442695, %v663_v40 }
 0x423   :  { %3212 = vpow2.f32 %v666_v36  ;;  %v659_v38 = vsub.f32 %v627_v20, %v639_v37  ;;  %v657_v43 = vpop.xlane.xlu1 %656 }
 0x424   :  { %3214 = vpow2.f32 %v670_v35  ;;  %v665_v46 = vsub.f32 %v633_v22, %v657_v43 }
 0x425   :  { %v668_v41 = vmul.f32 1.442695, %v659_v38 }
 0x426   :  { %v648_v44 = vpop.xlane.xlu0 %647  ;;  %v680_v51 = vmul.f32 1.442695, %v665_v46 }
 0x427   :  { %3216 = vpow2.f32 %v668_v41  ;;  %v662_v7 = vsub.f32 %v630_v24, %v648_v44 }
 0x428   :  { %3218 = vpow2.f32 %v672_v39 }
 0x429   :  { %3220 = vpow2.f32 %v676_v45  ;;  %v674_v8 = vmul.f32 1.442695, %v662_v7 }
 0x42a   :  { %v654_v47 = vpop.xlane.xlu0 %653  ;;  %3222 = vpow2.f32 %v680_v51  ;;  %v1083_v51 = vld [vmem:[%s3918_s7 + $0x10] sm:$0xff] }
 0x42b   :  { %v664_v52 = vsub.f32 %v632_v26, %v654_v47 }
 0x42d   :  { %v3586_v50 = vpop.eup %3212  ;;  %v678_v58 = vmul.f32 1.442695, %v664_v52  ;;  %v1084_v52 = vld [vmem:[%s3918_s7 + $0x18] sm:$0xff] }
 0x42e   :  { %v682_v53 = vsel %vm368_vm2, %v3586_v50, 0.0  ;;  %v3215_v54 = vpop.eup %3214 }
 0x42f   :  { %683 = vadd.xlane.f32.xlu0 %v682_v53  ;;  %v688_v59 = vsel %vm368_vm2, %v3215_v54, 0.0  ;;  %3224 = vpow2.f32 %v678_v58  ;;  %v3058_v53 = vpack.c.bf16 %v1084_v52, %v1083_v51  ;;  %v2591_v58 = vld [vmem:[%s3917_s6] ss:$0 sm:$0xff] }
 0x430   :  { %3226 = vpow2.f32 %v674_v8  ;;  %v1190_v8 = vld [vmem:[%s3920_s9 + $0x30] sm:$0xff]  ;;  %v2608_v52 = vld [vmem:[%s3916_s5 + $0x20] sm:$0xff] }
 0x431   :  { %v3590_v55 = vpop.eup %3216  ;;  %3059 = vmatprep.subr.bf16.mxu1 %v3058_v53 }
 0x432   :  { %v685_v60 = vsel %vm368_vm2, %v3590_v55, 0.0  ;;  %v3219_v61 = vpop.eup %3218  ;;  %3061 = vmatpush3.bf16.msra.mxu1 %v3058_v53  ;;  %v2609_v53 = vld [vmem:[%s3916_s5 + $0x28] sm:$0xff] }
 0x433   :  { %689 = vadd.xlane.f32.xlu0 %v688_v59  ;;  %686 = vadd.xlane.f32.xlu1 %v685_v60  ;;  %v691_v62 = vsel %vm368_vm2, %v3219_v61, 0.0  ;;  %v3596_v63 = vpop.eup %3220 }
 0x434   :  { %v697_v2 = vsel %vm368_vm2, %v3596_v63, 0.0  ;;  %v3600_v3 = vpop.eup %3222 }
 0x435   :  { %v703_v4 = vsel %vm368_vm2, %v3600_v3, 0.0 }
 0x437   :  { %692 = vadd.xlane.f32.xlu1 %v691_v62 }
 0x439   :  { %v3604_v5 = vpop.eup %3224 }
 0x43a   :  { %v700_v6 = vsel %vm368_vm2, %v3604_v5, 0.0  ;;  %v3227_v9 = vpop.eup %3226 }
 0x43b   :  { %698 = vadd.xlane.f32.xlu1 %v697_v2  ;;  %v694_v10 = vsel %vm368_vm2, %v3227_v9, 0.0 }
 0x43f   :  { %704 = vadd.xlane.f32.xlu1 %v703_v4 }
 0x443   :  { %701 = vadd.xlane.f32.xlu1 %v700_v6  ;;  %v1189_v6 = vld [vmem:[%s3920_s9 + $0x28] sm:$0xff] }
 0x449   :  { %3179 = vrot.lane.b32.xlu0 %v3545_v48, %s3368_s20 }
 0x454   :  { %3184 = vrot.lane.b32.xlu1 %v3545_v48, %s3369_s21 }
 0x468   :  { %695 = vadd.xlane.f32.xlu0 %v694_v10 }
 0x47e   :  { %3189 = vrot.lane.b32.xlu0 %v3545_v48, %s3370_s22 }
 0x4bc   :  { %v684_v14 = vpop.xlane.xlu0 %683 }
 0x4c0   :  { %v687_v15 = vpop.xlane.xlu1 %686  ;;  %v690_v16 = vpop.xlane.xlu0 %689 }
 0x4c1   :  { %3228 = vrcp.f32 %v690_v16 }
 0x4c2   :  { %3230 = vrcp.f32 %v684_v14 }
 0x4c4   :  { %v693_v17 = vpop.xlane.xlu1 %692  ;;  %v3180_v18 = vpop.permute.xlu0 %3179 }
 0x4c5   :  { %3232 = vrcp.f32 %v693_v17  ;;  %v3182_v48 = vunpack.i.h.bf16 %v3180_v18  ;;  %v3181_v19 = vunpack.i.l.bf16 %v3180_v18 }
 0x4c6   :  { %3234 = vrcp.f32 %v687_v15 }
 0x4c7   :  { %v3038_v20 = vpack.c.bf16 %v3182_v48, %v3181_v19 }
 0x4c8   :  { %v699_v21 = vpop.xlane.xlu1 %698 }
 0x4c9   :  { %3039 = vmatprep.subr.bf16.mxu0 %v3038_v20  ;;  %3236 = vrcp.f32 %v699_v21 }
 0x4ca   :  { %3041 = vmatpush3.bf16.msra.mxu0 %v3038_v20 }
 0x4cb   :  { %3043 = vmatprep.subr.bf16.mxu0 %v3547_v49  ;;  %v3229_v22 = vpop.eup %3228 }
 0x4cc   :  { %v705_v23 = vpop.xlane.xlu1 %704  ;;  %v716_v24 = vmul.f32 %v3229_v22, %v3215_v54  ;;  %v3231_v25 = vpop.eup %3230 }
 0x4cd   :  { %v714_v29 = vmul.f32 %v3231_v25, %v3586_v50 }
 0x4ce   :  { %2836 = vmatprep.mubr.msk.f32.mxu0 %vm368_vm2, %v716_v24 }
 0x4cf   :  { %v3233_v26 = vpop.eup %3232 }
 0x4d0   :  { %v717_v27 = vmul.f32 %v3233_v26, %v3219_v61  ;;  %v702_v28 = vpop.xlane.xlu1 %701  ;;  %v3235_v31 = vpop.eup %3234  ;;  %v2597_v26 = vld [vmem:[%s3921_s10] ss:$0 sm:$0xff] }
 0x4d1   :  { %v715_v35 = vmul.f32 %v3235_v31, %v3590_v55  ;;  %3238 = vrcp.f32 %v702_v28 }
 0x4d2   :  { %2837 = vmatmul.mubr.msk.f32.vlgmr.msra.gmra.mrb[4].mxu0 %vm368_vm2, %v717_v27 }
 0x4d3   :  { %3045 = vmatpush3.bf16.msra.mxu0 %v3547_v49  ;;  %2843 = vmatprep.mubr.msk.f32.mxu0 %vm368_vm2, %v714_v29  ;;  %v3237_v40 = vpop.eup %3236 }
 0x4d4   :  { %v3185_v30 = vpop.permute.xlu1 %3184  ;;  %v719_v45 = vmul.f32 %v3237_v40, %v3596_v63  ;;  %v1184_v63 = vld [vmem:[%s3920_s9] sm:$0xff] }
 0x4d5   :  { %v3187_v32 = vunpack.i.h.bf16 %v3185_v30  ;;  %v3186_v33 = vunpack.i.l.bf16 %v3185_v30 }
 0x4d7   :  { %v3046_v34 = vpack.c.bf16 %v3187_v32, %v3186_v33 }
 0x4d9   :  { %3047 = vmatprep.subr.bf16.mxu0 %v3046_v34 }
 0x4da   :  { %2844 = vmatmul.mubr.msk.f32.vlgmr.msra.gmra.mrb[4].mxu0 %vm368_vm2, %v715_v35 }
 0x4db   :  { %3049 = vmatpush3.bf16.msra.mxu0 %v3046_v34  ;;  %v3239_v41 = vpop.eup %3238 }
 0x4dc   :  { %v720_v46 = vmul.f32 %v3239_v41, %v3604_v5  ;;  %v1188_v5 = vld [vmem:[%s3920_s9 + $0x20] sm:$0xff] }
 0x4dd   :  { %v3070_v7 = vpack.c.bf16 %v1189_v6, %v1188_v5 }
 0x4f5   :  { %v696_v36 = vpop.xlane.xlu0 %695 }
 0x4f6   :  { %3240 = vrcp.f32 %v696_v36 }
 0x4f7   :  { %3242 = vrcp.f32 %v705_v23 }
 0x4f9   :  { %v3190_v37 = vpop.permute.xlu0 %3189 }
 0x4fa   :  { %v3192_v38 = vunpack.i.h.bf16 %v3190_v37  ;;  %v3191_v49 = vunpack.i.l.bf16 %v3190_v37 }
 0x4fc   :  { %v3050_v39 = vpack.c.bf16 %v3192_v38, %v3191_v49 }
 0x4fe   :  { %3051 = vmatprep.subr.bf16.mxu0 %v3050_v39 }
 0x500   :  { %v3241_v43 = vpop.eup %3240 }
 0x501   :  { %v718_v44 = vmul.f32 %v3241_v43, %v3227_v9  ;;  %v3243_v47 = vpop.eup %3242  ;;  %v1191_v9 = vld [vmem:[%s3920_s9 + $0x38] sm:$0xff] }
 0x502   :  { %v721_v50 = vmul.f32 %v3243_v47, %v3600_v3  ;;  %v1187_v3 = vld [vmem:[%s3920_s9 + $0x18] sm:$0xff]  ;;  %v3074_v10 = vpack.c.bf16 %v1191_v9, %v1190_v8  ;;  %v2604_v47 = vld [vmem:[%s3915_s4 + $0x30] sm:$0xff] }
 0x503   :  { %2850 = vmatprep.mubr.msk.f32.mxu0 %vm368_vm2, %v718_v44  ;;  %v2602_v44 = vld [vmem:[%s3915_s4 + $0x20] sm:$0xff]  ;;  %v2611_v8 = vld [vmem:[%s3916_s5 + $0x38] sm:$0xff] }
 0x504   :  { %2851 = vmatmul.mubr.msk.f32.vlgmr.msra.gmra.mrb[4].mxu0 %vm368_vm2, %v719_v45  ;;  %v2603_v45 = vld [vmem:[%s3915_s4 + $0x28] sm:$0xff] }
 0x505   :  { %3053 = vmatpush3.bf16.msra.mxu0 %v3050_v39  ;;  %2857 = vmatprep.mubr.msk.f32.mxu0 %vm368_vm2, %v720_v46  ;;  %v3078_v46 = vpack.c.bf16 %v2603_v45, %v2602_v44 }
 0x507   :  { %3079 = vmatprep.subr.bf16.mxu0 %v3078_v46 }
 0x50c   :  { %2858 = vmatmul.mubr.msk.f32.vlgmr.msra.gmra.mrb[4].mxu0 %vm368_vm2, %v721_v50  ;;  %v2605_v50 = vld [vmem:[%s3915_s4 + $0x38] sm:$0xff] }
 0x50d   :  { %3081 = vmatpush3.bf16.msra.mxu0 %v3078_v46  ;;  %v3082_v51 = vpack.c.bf16 %v2605_v50, %v2604_v47 }
 0x50f   :  { %3083 = vmatprep.subr.bf16.mxu0 %v3082_v51 }
 0x511   :  { %3085 = vmatpush3.bf16.msra.mxu0 %v3082_v51 }
 0x5df   :  { %v2859_v54 = vpop.f32.mrb[4].mxu0 }
 0x5e0   :  { %v1071_v55 = vadd.f32 %v2859_v54, %v3474_v1  ;;  %v1059_v59 = vpop.f32.mrb[5].mxu0  ;;  %v1185_v1 = vld [vmem:[%s3920_s9 + $0x8] sm:$0xff]  ;;  %v3086_v54 = vpack.c.bf16 %v2609_v53, %v2608_v52 }
 0x5e1   :  { %v1070_v60 = vadd.f32 %v1059_v59, %v3472_v0  ;;  %v3062_v2 = vpack.c.bf16 %v1185_v1, %v1184_v63  ;;  %v1186_v0 = vld [vmem:[%s3920_s9 + $0x10] sm:$0xff]  ;;  %v2600_v1 = vld [vmem:[%s3913_s2 + $0x1] ss:$0 sm:$0xff] }
 0x5e2   :  { %v1080_v62 = vadd.f32 %v2591_v58, %v1071_v55  ;;  %v3066_v4 = vpack.c.bf16 %v1187_v3, %v1186_v0  ;;  %3087 = vmatprep.subr.bf16.mxu0 %v3086_v54  ;;  %v2601_v0 = vld [vmem:[%s3914_s3 + $0x1] ss:$0 sm:$0xff] }
 0x5e3   :  { %v1079_v61 = vadd.f32 %v2591_v58, %v1070_v60  ;;  %3063 = vmatprep.subr.bf16.mxu1 %v3062_v2 }
 0x5e5   :  { %2868 = vmatprep.mubr.msk.f32.mxu1 %vm79_vm0, %v1079_v61 }
 0x5e6   :  { %2869 = vmatmul.mubr.msk.f32.vlgmr.msra.gmra.mrb[8].mxu1 %vm79_vm0, %v1080_v62 }
 0x5e7   :  { %3065 = vmatpush3.bf16.msra.mxu1 %v3062_v2 }
 0x5e8   :  { %3067 = vmatprep.subr.bf16.mxu1 %v3066_v4 }
 0x5eb   :  { %3069 = vmatpush3.bf16.msra.mxu1 %v3066_v4 }
 0x5ec   :  { %3071 = vmatprep.subr.bf16.mxu1 %v3070_v7 }
 0x5ef   :  { %3073 = vmatpush3.bf16.msra.mxu1 %v3070_v7  ;;  %v2610_v7 = vld [vmem:[%s3916_s5 + $0x30] sm:$0xff] }
 0x5f0   :  { %3075 = vmatprep.subr.bf16.mxu1 %v3074_v10 }
 0x5f3   :  { %3077 = vmatpush3.bf16.msra.mxu1 %v3074_v10 }
 0x6b9   :  { %v2870_v12 = vpop.f32.mrb[8].mxu1 }
 0x6ba   :  { %v1170_v13 = vadd.f32 %v2870_v12, %v2592_v11  ;;  %v1164_v14 = vpop.f32.mrb[9].mxu1 }
 0x6bb   :  { %v1165_v15 = vadd.f32 %v2592_v11, %v1164_v14  ;;  %v3090_v11 = vpack.c.bf16 %v2611_v8, %v2610_v7 }
 0x6bc   :  { %v1177_v16 = vmul.f32 0.70710677, %v1170_v13  ;;  %v1174_v22 = vmul.f32 0.5, %v1170_v13 }
 0x6bd   :  { %v1176_v17 = vmul.f32 0.70710677, %v1165_v15  ;;  %v1173_v20 = vmul.f32 0.5, %v1165_v15 }
 0x6be   :  { %3244 = verf.f32 %v1177_v16 }
 0x6bf   :  { %3246 = verf.f32 %v1176_v17 }
 0x6c8   :  { %v3245_v18 = vpop.eup %3244 }
 0x6c9   :  { %v3247_v48 = vpop.eup %3246  ;;  %v1181_v19 = vadd.f32 1.0, %v3245_v18 }
 0x6ca   :  { %v1180_v21 = vadd.f32 1.0, %v3247_v48 }
 0x6cb   :  { %v1183_v24 = vmul.f32 %v1181_v19, %v1174_v22 }
 0x6cc   :  { %v1182_v23 = vmul.f32 %v1180_v21, %v1173_v20 }
 0x6ce   :  { %2887 = vmatprep.mubr.msk.f32.mxu1 %vm1192_vm3, %v1182_v23 }
 0x6cf   :  { %2888 = vmatmul.mubr.msk.f32.vlgmr.msra.gmra.mrb[10].mxu1 %vm1192_vm3, %v1183_v24 }
 0x7a2   :  { %v2889_v25 = vpop.f32.mrb[10].mxu1 }
 0x7a3   :  { %v1275_v27 = vadd.f32 %v2889_v25, %v1080_v62  ;;  %v1265_v28 = vpop.f32.mrb[11].mxu1 }
 0x7a4   :  { %v1274_v29 = vadd.f32 %v1265_v28, %v1079_v61 }
 0x7a5   :  { %v3681_v30 = vadd.f32 %v2597_v26, %v1275_v27 }
 0x7a6   :  { %v3683_v31 = vadd.f32 %v2597_v26, %v1274_v29 }
 0x7a7   :  { %v1292_v32 = vsel %vm79_vm0, %v3681_v30, 0.0 }
 0x7a8   :  { %1293 = vadd.xlane.f32.xlu0 %v1292_v32  ;;  %v1289_v33 = vsel %vm79_vm0, %v3683_v31, 0.0 }
 0x7a9   :  { %1290 = vadd.xlane.f32.xlu1 %v1289_v33 }
 0x835   :  { %v1294_v34 = vpop.xlane.xlu0 %1293 }
 0x836   :  { %v1296_v35 = vmul.f32 0.03125, %v1294_v34  ;;  %v1291_v36 = vpop.xlane.xlu1 %1290 }
 0x837   :  { %v1295_v37 = vmul.f32 0.03125, %v1291_v36 }
 0x838   :  { %v1298_v38 = vsub.f32 %v3681_v30, %v1296_v35 }
 0x839   :  { %v1297_v49 = vsub.f32 %v3683_v31, %v1295_v37 }
 0x83a   :  { %v1300_v41 = vmul.f32 %v1298_v38, %v1298_v38 }
 0x83b   :  { %v1299_v39 = vmul.f32 %v1297_v49, %v1297_v49 }
 0x83c   :  { %v1304_v43 = vsel %vm79_vm0, %v1300_v41, 0.0 }
 0x83d   :  { %v1301_v40 = vsel %vm79_vm0, %v1299_v39, 0.0 }
 0x83e   :  { %1302 = vadd.xlane.f32.xlu0 %v1301_v40 }
 0x842   :  { %1305 = vadd.xlane.f32.xlu0 %v1304_v43 }
 0x8cb   :  { %v1303_v55 = vpop.xlane.xlu0 %1302 }
 0x8cc   :  { %v1307_v58 = vmul.f32 0.03125, %v1303_v55 }
 0x8ce   :  { %v1309_v59 = vadd.f32 1e-05, %v1307_v58 }
 0x8cf   :  { %v1306_v60 = vpop.xlane.xlu0 %1305 }
 0x8d0   :  { %3248 = vrsqrt.f32 %v1309_v59  ;;  %v1308_v61 = vmul.f32 0.03125, %v1306_v60 }
 0x8d2   :  { %v1310_v62 = vadd.f32 1e-05, %v1308_v61 }
 0x8d4   :  { %3250 = vrsqrt.f32 %v1310_v62 }
 0x8da   :  { %v3249_v63 = vpop.eup %3248 }
 0x8db   :  { %v1313_v2 = vmul.f32 %v3249_v63, %v1297_v49 }
 0x8dd   :  { %v1321_v3 = vmul.f32 %v2600_v1, %v1313_v2 }
 0x8de   :  { %v3251_v4 = vpop.eup %3250 }
 0x8df   :  { %v1314_v5 = vmul.f32 %v3251_v4, %v1298_v38  ;;  %v1329_v6 = vadd.f32 %v2601_v0, %v1321_v3 }
 0x8e1   :  { %v1322_v9 = vmul.f32 %v2600_v1, %v1314_v5  ;;  %2898 = vmatprep.mubr.msk.f32.mxu0 %vm79_vm0, %v1329_v6 }
 0x8e3   :  { %v1330_v10 = vadd.f32 %v2601_v0, %v1322_v9 }
 0x8e5   :  { %v3094_v12 = vpack.c.bf16 %v1330_v10, %v1329_v6  ;;  %2899 = vmatmul.mubr.msk.f32.vlgmr.msra.gmra.mrb[6].mxu0 %vm79_vm0, %v1330_v10 }
 0x8e6   :  { %3089 = vmatpush3.bf16.msra.mxu0 %v3086_v54  ;;  %2909 = vmatprep.mubr.msk.f32.mxu0 %vm79_vm0, %v1329_v6 }
 0x8e7   :  { %3096 = vmatprep.subr.msk.bf16.mxu1 %vm3517_vm1, %v3094_v12  ;;  %3091 = vmatprep.subr.bf16.mxu0 %v3090_v11 }
 0x8e8   :  { %3099 = vmatpush3.bf16.xpose.msk.msra.mxu1 %vm3517_vm1, %v3094_v12 }
 0x8e9   :  { %3108 = vmatprep.subr.msk.bf16.mxu1 %vm3517_vm1, %v3094_v12 }
 0x8ea   :  { %3093 = vmatpush3.bf16.msra.mxu0 %v3090_v11 }
 0x8eb   :  { %3102 = vmatprep.subr.msk.bf16.mxu0 %vm3517_vm1, %v3094_v12 }
 0x8ed   :  { %2910 = vmatmul.mubr.msk.f32.vlgmr.msra.gmra.mrb[8].mxu0 %vm79_vm0, %v1330_v10 }
 0x8f3   :  { %3105 = vmatpush3.bf16.xpose.msk.msra.mxu0 %vm3517_vm1, %v3094_v12 }
 0x8f4   :  { %3114 = vmatprep.subr.msk.bf16.mxu0 %vm3517_vm1, %v3094_v12 }
 0x9b8   :  { %v2900_v13 = vpop.f32.mrb[6].mxu0 }
 0x9b9   :  { %1582 = vrot.lane.b32.xlu0 %v2900_v13, %s3368_s20  ;;  %v1408_v14 = vpop.f32.mrb[7].mxu0 }
 0x9ba   :  { %1580 = vrot.lane.b32.xlu1 %v1408_v14, %s3368_s20  ;;  %2916 = vmatprep.mubr.msk.f32.mxu1 %vm79_vm0, %v1408_v14 }
 0x9bb   :  { %2917 = vmatmul.mubr.msk.f32.vlgmr.msra.gmra.mrb[12].mxu1 %vm79_vm0, %v2900_v13 }
 0x9bc   :  { %3111 = vmatpush3.bf16.xpose.msk.msra.mxu1 %vm3517_vm1, %v3094_v12 }
 0x9bd   :  { %1752 = vrot.lane.b32.xlu0 %v2900_v13, %s3370_s22 }
 0x9be   :  { %1665 = vrot.lane.b32.xlu1 %v1408_v14, %s3369_s21 }
 0x9c0   :  { %v2911_v15 = vpop.f32.mrb[8].mxu0 }
 0x9c1   :  { %v1488_v16 = vpop.f32.mrb[9].mxu0 }
 0x9c2   :  { %1667 = vrot.lane.b32.xlu1 %v2900_v13, %s3369_s21  ;;  %v3748_v17 = vpack.i.bf16 %v2911_v15, %v1488_v16  ;;  %v3750_v18 = vpack.c.bf16 %v2911_v15, %v1488_v16 }
 0x9c6   :  { %1750 = vrot.lane.b32.xlu1 %v1408_v14, %s3370_s22 }
 0xa2b   :  { %v1583_v19 = vpop.permute.xlu0 %1582 }
 0xa2c   :  { %v1581_v48 = vpop.permute.xlu1 %1580 }
 0xa2d   :  { %2923 = vmatprep.mubr.msk.f32.mxu0 %vm79_vm0, %v1581_v48 }
 0xa2e   :  { %2924 = vmatmul.mubr.msk.f32.vlgmr.msra.gmra.mrb[10].mxu0 %vm79_vm0, %v1583_v19 }
 0xa2f   :  { %3117 = vmatpush3.bf16.xpose.msk.msra.mxu0 %vm3517_vm1, %v3094_v12  ;;  %v1753_v23 = vpop.permute.xlu0 %1752 }
 0xa30   :  { %v1666_v20 = vpop.permute.xlu1 %1665 }
 0xa31   :  { %2930 = vmatprep.mubr.msk.f32.mxu1 %vm79_vm0, %v1666_v20 }
 0xa34   :  { %v1668_v21 = vpop.permute.xlu1 %1667 }
 0xa35   :  { %2931 = vmatmul.mubr.msk.f32.vlgmr.msra.gmra.mrb[14].mxu1 %vm79_vm0, %v1668_v21 }
 0xa38   :  { %v1751_v22 = vpop.permute.xlu1 %1750 }
 0xa39   :  { %2937 = vmatprep.mubr.msk.f32.mxu0 %vm79_vm0, %v1751_v22 }
 0xa3a   :  { %2938 = vmatmul.mubr.msk.f32.vlgmr.msra.gmra.mrb[12].mxu0 %vm79_vm0, %v1753_v23 }
 0xa8e   :  { %v2918_v24 = vpop.f32.mrb[12].mxu1 }
 0xa8f   :  { %v1575_v25 = vadd.f32 %v2918_v24, %v3558_v56  ;;  %v1569_v26 = vpop.f32.mrb[13].mxu1 }
 0xa90   :  { %v1570_v27 = vadd.f32 %v1569_v26, %v3560_v57 }
 0xa91   :  { %1579 = vst.msk [vmem:[#allocation2 + $0x8] sm:$0xff] %vm368_vm2, %v1575_v25 }
 0xa92   :  { %1578 = vst.msk [vmem:[#allocation2] sm:$0xff] %vm368_vm2, %v1570_v27 }
 0xa98   :  { %v1836_v47 = vld [vmem:[#allocation2 + $0x8] sm:$0xff] }
 0xa99   :  { %v1835_v41 = vld [vmem:[#allocation2] sm:$0xff]  ;;  %v1846_v51 = vsel %vm368_vm2, %v1836_v47, -inf }
 0xa9a   :  { %v1843_v46 = vsel %vm368_vm2, %v1835_v41, -inf }
 0xb01   :  { %v2925_v42 = vpop.f32.mrb[10].mxu0 }
 0xb02   :  { %v1660_v28 = vadd.f32 %v2925_v42, %v3558_v56  ;;  %v1654_v29 = vpop.f32.mrb[11].mxu0 }
 0xb03   :  { %v1655_v32 = vadd.f32 %v1654_v29, %v3560_v57 }
 0xb04   :  { %1664 = vst.msk [vmem:[#allocation2 + $0x18] sm:$0xff] %vm368_vm2, %v1660_v28 }
 0xb05   :  { %1663 = vst.msk [vmem:[#allocation2 + $0x10] sm:$0xff] %vm368_vm2, %v1655_v32 }
 0xb08   :  { %v2932_v33 = vpop.f32.mrb[14].mxu1 }
 0xb09   :  { %v1745_v34 = vadd.f32 %v2932_v33, %v3558_v56  ;;  %v1739_v35 = vpop.f32.mrb[15].mxu1 }
 0xb0a   :  { %v1740_v36 = vadd.f32 %v1739_v35, %v3560_v57 }
 0xb0b   :  { %1749 = vst.msk [vmem:[#allocation2 + $0x28] sm:$0xff] %vm368_vm2, %v1745_v34  ;;  %v1838_v37 = vld [vmem:[#allocation2 + $0x18] sm:$0xff] }
 0xb0c   :  { %1748 = vst.msk [vmem:[#allocation2 + $0x20] sm:$0xff] %vm368_vm2, %v1740_v36  ;;  %v1852_v38 = vsel %vm368_vm2, %v1838_v37, -inf  ;;  %v1837_v49 = vld [vmem:[#allocation2 + $0x10] sm:$0xff] }
 0xb0d   :  { %1853 = vmax.xlane.f32.xlu0 %v1852_v38  ;;  %v2939_v39 = vpop.f32.mrb[12].mxu0  ;;  %v1849_v40 = vsel %vm368_vm2, %v1837_v49, -inf  ;;  %v2641_v38 = vld [vmem:[%s3918_s7 + $0x28] sm:$0xff] }
 0xb0e   :  { %v1830_v43 = vadd.f32 %v2939_v39, %v3558_v56  ;;  %v1824_v44 = vpop.f32.mrb[13].mxu0  ;;  %1850 = vmax.xlane.f32.xlu1 %v1849_v40 }
 0xb0f   :  { %v1825_v45 = vadd.f32 %v1824_v44, %v3560_v57 }
 0xb10   :  { %1834 = vst.msk [vmem:[#allocation2 + $0x38] sm:$0xff] %vm368_vm2, %v1830_v43 }
 0xb11   :  { %1833 = vst.msk [vmem:[#allocation2 + $0x30] sm:$0xff] %vm368_vm2, %v1825_v45  ;;  %1844 = vmax.xlane.f32.xlu0 %v1843_v46 }
 0xb12   :  { %v1840_v56 = vld [vmem:[#allocation2 + $0x28] sm:$0xff] }
 0xb13   :  { %v3780_v50 = vld [vmem:[#allocation2 + $0x20] sm:$0xff]  ;;  %v1858_v57 = vsel %vm368_vm2, %v1840_v56, -inf }
 0xb14   :  { %v1855_v52 = vsel %vm368_vm2, %v3780_v50, -inf }
 0xb15   :  { %1847 = vmax.xlane.f32.xlu0 %v1846_v51  ;;  %1856 = vmax.xlane.f32.xlu1 %v1855_v52 }
 0xb17   :  { %v1842_v55 = vld [vmem:[#allocation2 + $0x38] sm:$0xff] }
 0xb18   :  { %v1841_v53 = vld [vmem:[#allocation2 + $0x30] sm:$0xff]  ;;  %v1864_v58 = vsel %vm368_vm2, %v1842_v55, -inf }
 0xb19   :  { %1859 = vmax.xlane.f32.xlu0 %v1858_v57  ;;  %v1861_v54 = vsel %vm368_vm2, %v1841_v53, -inf }
 0xb1a   :  { %1862 = vmax.xlane.f32.xlu1 %v1861_v54 }
 0xb1d   :  { %1865 = vmax.xlane.f32.xlu0 %v1864_v58 }
 0xb9a   :  { %v1854_v59 = vpop.xlane.xlu0 %1853 }
 0xb9b   :  { %v1851_v60 = vpop.xlane.xlu1 %1850  ;;  %v1870_v1 = vsub.f32 %v1838_v37, %v1854_v59  ;;  %v2640_v37 = vld [vmem:[%s3918_s7 + $0x20] sm:$0xff] }
 0xb9c   :  { %v1869_v61 = vsub.f32 %v1837_v49, %v1851_v60  ;;  %v3134_v49 = vpack.c.bf16 %v2641_v38, %v2640_v37 }
 0xb9d   :  { %v1881_v6 = vmul.f32 1.442695, %v1870_v1 }
 0xb9e   :  { %v1845_v62 = vpop.xlane.xlu0 %1844  ;;  %v1879_v2 = vmul.f32 1.442695, %v1869_v61  ;;  %3135 = vmatprep.subr.bf16.mxu0 %v3134_v49 }
 0xb9f   :  { %v1867_v63 = vsub.f32 %v1835_v41, %v1845_v62  ;;  %3137 = vmatpush3.bf16.msra.mxu0 %v3134_v49 }
 0xba1   :  { %v1875_v0 = vmul.f32 1.442695, %v1867_v63 }
 0xba2   :  { %v1848_v3 = vpop.xlane.xlu0 %1847  ;;  %v1857_v5 = vpop.xlane.xlu1 %1856 }
 0xba3   :  { %3252 = vpow2.f32 %v1875_v0  ;;  %v1868_v4 = vsub.f32 %v1836_v47, %v1848_v3  ;;  %v1871_v33 = vsub.f32 %v3780_v50, %v1857_v5 }
 0xba4   :  { %3254 = vpow2.f32 %v1879_v2 }
 0xba5   :  { %v1877_v7 = vmul.f32 1.442695, %v1868_v4  ;;  %v1883_v34 = vmul.f32 1.442695, %v1871_v33 }
 0xba6   :  { %v1860_v8 = vpop.xlane.xlu0 %1859 }
 0xba7   :  { %3256 = vpow2.f32 %v1877_v7  ;;  %v1872_v9 = vsub.f32 %v1840_v56, %v1860_v8  ;;  %v1863_v11 = vpop.xlane.xlu1 %1862 }
 0xba8   :  { %3258 = vpow2.f32 %v1881_v6  ;;  %v1873_v15 = vsub.f32 %v1841_v53, %v1863_v11 }
 0xba9   :  { %v1885_v10 = vmul.f32 1.442695, %v1872_v9 }
 0xbaa   :  { %v1866_v12 = vpop.xlane.xlu0 %1865  ;;  %v1887_v21 = vmul.f32 1.442695, %v1873_v15 }
 0xbab   :  { %v1874_v13 = vsub.f32 %v1842_v55, %v1866_v12  ;;  %3260 = vpow2.f32 %v1885_v10  ;;  %v2642_v12 = vld [vmem:[%s3918_s7 + $0x30] sm:$0xff] }
 0xbad   :  { %v3788_v14 = vpop.eup %3252  ;;  %v1889_v16 = vmul.f32 1.442695, %v1874_v13  ;;  %v2643_v13 = vld [vmem:[%s3918_s7 + $0x38] sm:$0xff]  ;;  %s3336_s7 = scalar_lea.vmem %s2549_s26, 256 }
 0xbae   :  { %v1891_v48 = vsel %vm368_vm2, %v3788_v14, 0.0  ;;  %v3255_v19 = vpop.eup %3254  ;;  %p3337_p2 = scmp.ne.s32.totalorder %s2549_s26, %s3336_s7  ;;  %p3342_p4 = scmp.lt.s32.totalorder %s3336_s7, %s3336_s7 }
 0xbaf   :  { %1892 = vadd.xlane.f32.xlu1 %v1891_v48  ;;  %3262 = vpow2.f32 %v1889_v16  ;;  %v1897_v23 = vsel %vm368_vm2, %v3255_v19, 0.0  ;;  %v2639_v48 = vld [vmem:[%s3917_s6 + $0x1] ss:$0 sm:$0xff] }
 0xbb0   :  { %3264 = vpow2.f32 %v1887_v21  ;;  %p3343_p5 = por %p3342_p4, %p3341_p3 }
 0xbb1   :  { %v3792_v20 = vpop.eup %3256  ;;  %3266 = vpow2.f32 %v1883_v34  ;;  %v2645_v34 = vld [vmem:[%s3919_s8 + $0x1] ss:$0 sm:$0xff] }
 0xbb2   :  { %v1894_v22 = vsel %vm368_vm2, %v3792_v20, 0.0  ;;  %v3259_v24 = vpop.eup %3258  ;;  %p3344_p6 = pnand %p3343_p5, %p3337_p2 }
 0xbb3   :  { %1895 = vadd.xlane.f32.xlu0 %v1894_v22  ;;  %1898 = vadd.xlane.f32.xlu1 %v1897_v23  ;;  %v1900_v25 = vsel %vm368_vm2, %v3259_v24, 0.0  ;;  %v2648_v23 = vld [vmem:[%s3920_s9 + $0x40] sm:$0xff] }
 0xbb5   :  { %v3798_v26 = vpop.eup %3260 }
 0xbb6   :  { %v1906_v27 = vsel %vm368_vm2, %v3798_v26, 0.0 }
 0xbb7   :  { %1901 = vadd.xlane.f32.xlu0 %v1900_v25  ;;  %v2651_v25 = vld [vmem:[%s3920_s9 + $0x58] sm:$0xff] }
 0xbb9   :  { %v3802_v42 = vpop.eup %3262 }
 0xbba   :  { %v1912_v28 = vsel %vm368_vm2, %v3802_v42, 0.0  ;;  %v3806_v29 = vpop.eup %3264 }
 0xbbb   :  { %1907 = vadd.xlane.f32.xlu0 %v1906_v27  ;;  %v1909_v32 = vsel %vm368_vm2, %v3806_v29, 0.0  ;;  %v3267_v35 = vpop.eup %3266  ;;  %v2652_v27 = vld [vmem:[%s3920_s9 + $0x60] sm:$0xff] }
 0xbbc   :  { %v1903_v36 = vsel %vm368_vm2, %v3267_v35, 0.0 }
 0xbbf   :  { %1913 = vadd.xlane.f32.xlu0 %v1912_v28 }
 0xbc3   :  { %1910 = vadd.xlane.f32.xlu0 %v1909_v32  ;;  %v2655_v32 = vld [vmem:[%s3920_s9 + $0x78] sm:$0xff] }
 0xbc4   :  { %3194 = vrot.lane.b32.xlu1 %v3748_v17, %s3368_s20 }
 0xbd9   :  { %3199 = vrot.lane.b32.xlu0 %v3748_v17, %s3369_s21 }
 0xbe8   :  { %1904 = vadd.xlane.f32.xlu1 %v1903_v36 }
 0xbf9   :  { %3204 = vrot.lane.b32.xlu1 %v3748_v17, %s3370_s22 }
 0xc3c   :  { %v1893_v39 = vpop.xlane.xlu1 %1892 }
 0xc40   :  { %v1896_v40 = vpop.xlane.xlu0 %1895  ;;  %v1899_v41 = vpop.xlane.xlu1 %1898 }
 0xc41   :  { %3268 = vrcp.f32 %v1899_v41 }
 0xc42   :  { %3270 = vrcp.f32 %v1893_v39 }
 0xc44   :  { %v1902_v43 = vpop.xlane.xlu0 %1901  ;;  %v3195_v44 = vpop.permute.xlu1 %3194 }
 0xc45   :  { %3272 = vrcp.f32 %v1902_v43  ;;  %v3197_v17 = vunpack.i.h.bf16 %v3195_v44  ;;  %v3196_v45 = vunpack.i.l.bf16 %v3195_v44 }
 0xc46   :  { %3274 = vrcp.f32 %v1896_v40 }
 0xc47   :  { %v3118_v46 = vpack.c.bf16 %v3197_v17, %v3196_v45 }
 0xc48   :  { %v1908_v47 = vpop.xlane.xlu0 %1907 }
 0xc49   :  { %3119 = vmatprep.subr.bf16.mxu1 %v3118_v46  ;;  %3276 = vrcp.f32 %v1908_v47 }
 0xc4a   :  { %3121 = vmatpush3.bf16.msra.mxu1 %v3118_v46 }
 0xc4b   :  { %3123 = vmatprep.subr.bf16.mxu1 %v3750_v18  ;;  %v3269_v50 = vpop.eup %3268 }
 0xc4c   :  { %v1914_v51 = vpop.xlane.xlu0 %1913  ;;  %v1925_v52 = vmul.f32 %v3269_v50, %v3255_v19  ;;  %v3271_v56 = vpop.eup %3270 }
 0xc4d   :  { %v1923_v55 = vmul.f32 %v3271_v56, %v3788_v14  ;;  %v3138_v14 = vpack.c.bf16 %v2643_v13, %v2642_v12  ;;  %v2661_v13 = vld [vmem:[%s3923_s12] ss:$0 sm:$0xff] }
 0xc4e   :  { %2944 = vmatprep.mubr.msk.f32.mxu1 %vm368_vm2, %v1925_v52 }
 0xc4f   :  { %v3273_v57 = vpop.eup %3272  ;;  %3139 = vmatprep.subr.bf16.mxu0 %v3138_v14 }
 0xc50   :  { %v1926_v53 = vmul.f32 %v3273_v57, %v3259_v24  ;;  %v1911_v54 = vpop.xlane.xlu0 %1910  ;;  %v3275_v59 = vpop.eup %3274  ;;  %3141 = vmatpush3.bf16.msra.mxu0 %v3138_v14 }
 0xc51   :  { %v1924_v63 = vmul.f32 %v3275_v59, %v3792_v20  ;;  %3278 = vrcp.f32 %v1911_v54 }
 0xc52   :  { %2945 = vmatmul.mubr.msk.f32.vlgmr.msra.gmra.mrb[16].mxu1 %vm368_vm2, %v1926_v53 }
 0xc53   :  { %3125 = vmatpush3.bf16.msra.mxu1 %v3750_v18  ;;  %2951 = vmatprep.mubr.msk.f32.mxu1 %vm368_vm2, %v1923_v55  ;;  %v3277_v4 = vpop.eup %3276 }
 0xc54   :  { %v3200_v58 = vpop.permute.xlu0 %3199  ;;  %v1928_v8 = vmul.f32 %v3277_v4, %v3798_v26 }
 0xc55   :  { %v3202_v60 = vunpack.i.h.bf16 %v3200_v58  ;;  %v3201_v61 = vunpack.i.l.bf16 %v3200_v58 }
 0xc57   :  { %v3126_v62 = vpack.c.bf16 %v3202_v60, %v3201_v61 }
 0xc59   :  { %3127 = vmatprep.subr.bf16.mxu1 %v3126_v62 }
 0xc5a   :  { %2952 = vmatmul.mubr.msk.f32.vlgmr.msra.gmra.mrb[16].mxu1 %vm368_vm2, %v1924_v63 }
 0xc5b   :  { %3129 = vmatpush3.bf16.msra.mxu1 %v3126_v62  ;;  %v3279_v5 = vpop.eup %3278 }
 0xc5c   :  { %v1929_v9 = vmul.f32 %v3279_v5, %v3806_v29  ;;  %v2654_v29 = vld [vmem:[%s3920_s9 + $0x70] sm:$0xff] }
 0xc5d   :  { %v3154_v33 = vpack.c.bf16 %v2655_v32, %v2654_v29 }
 0xc75   :  { %v1905_v1 = vpop.xlane.xlu1 %1904 }
 0xc76   :  { %3280 = vrcp.f32 %v1905_v1 }
 0xc77   :  { %3282 = vrcp.f32 %v1914_v51  ;;  %v2659_v51 = vld [vmem:[%s3921_s10 + $0x1] ss:$0 sm:$0xff] }
 0xc79   :  { %v3205_v2 = vpop.permute.xlu1 %3204 }
 0xc7a   :  { %v3207_v0 = vunpack.i.h.bf16 %v3205_v2  ;;  %v3206_v18 = vunpack.i.l.bf16 %v3205_v2 }
 0xc7c   :  { %v3130_v3 = vpack.c.bf16 %v3207_v0, %v3206_v18 }
 0xc7e   :  { %3131 = vmatprep.subr.bf16.mxu1 %v3130_v3 }
 0xc80   :  { %v3281_v6 = vpop.eup %3280 }
 0xc81   :  { %v1927_v7 = vmul.f32 %v3281_v6, %v3267_v35  ;;  %v3283_v10 = vpop.eup %3282 }
 0xc82   :  { %v1930_v11 = vmul.f32 %v3283_v10, %v3802_v42  ;;  %v2653_v42 = vld [vmem:[%s3920_s9 + $0x68] sm:$0xff] }
 0xc83   :  { %2958 = vmatprep.mubr.msk.f32.mxu1 %vm368_vm2, %v1927_v7  ;;  %v3150_v28 = vpack.c.bf16 %v2653_v42, %v2652_v27 }
 0xc84   :  { %2959 = vmatmul.mubr.msk.f32.vlgmr.msra.gmra.mrb[16].mxu1 %vm368_vm2, %v1928_v8 }
 0xc85   :  { %3133 = vmatpush3.bf16.msra.mxu1 %v3130_v3  ;;  %2965 = vmatprep.mubr.msk.f32.mxu1 %vm368_vm2, %v1929_v9 }
 0xc8c   :  { %2966 = vmatmul.mubr.msk.f32.vlgmr.msra.gmra.mrb[16].mxu1 %vm368_vm2, %v1930_v11  ;;  %v2660_v11 = vld [vmem:[%s3922_s11] ss:$0 sm:$0xff] }
 0xd5f   :  { %v2967_v15 = vpop.f32.mrb[16].mxu1 }
 0xd60   :  { %v2280_v16 = vadd.f32 %v2967_v15, %v3681_v30  ;;  %v2268_v19 = vpop.f32.mrb[17].mxu1  ;;  %v2649_v30 = vld [vmem:[%s3920_s9 + $0x48] sm:$0xff] }
 0xd61   :  { %v2279_v20 = vadd.f32 %v2268_v19, %v3683_v31  ;;  %v3142_v24 = vpack.c.bf16 %v2649_v30, %v2648_v23  ;;  %v2650_v31 = vld [vmem:[%s3920_s9 + $0x50] sm:$0xff] }
 0xd62   :  { %v2290_v22 = vadd.f32 %v2639_v48, %v2280_v16  ;;  %v3146_v26 = vpack.c.bf16 %v2651_v25, %v2650_v31 }
 0xd63   :  { %v2289_v21 = vadd.f32 %v2639_v48, %v2279_v20  ;;  %3143 = vmatprep.subr.bf16.mxu0 %v3142_v24 }
 0xd65   :  { %2976 = vmatprep.mubr.msk.f32.mxu0 %vm79_vm0, %v2289_v21 }
 0xd66   :  { %2977 = vmatmul.mubr.msk.f32.vlgmr.msra.gmra.mrb[14].mxu0 %vm79_vm0, %v2290_v22 }
 0xd67   :  { %3145 = vmatpush3.bf16.msra.mxu0 %v3142_v24 }
 0xd68   :  { %3147 = vmatprep.subr.bf16.mxu0 %v3146_v26 }
 0xd6b   :  { %3149 = vmatpush3.bf16.msra.mxu0 %v3146_v26 }
 0xd6c   :  { %3151 = vmatprep.subr.bf16.mxu0 %v3150_v28 }
 0xd6f   :  { %3153 = vmatpush3.bf16.msra.mxu0 %v3150_v28 }
 0xd70   :  { %3155 = vmatprep.subr.bf16.mxu0 %v3154_v33 }
 0xd73   :  { %3157 = vmatpush3.bf16.msra.mxu0 %v3154_v33 }
 0xe39   :  { %v2978_v35 = vpop.f32.mrb[14].mxu0 }
 0xe3a   :  { %v2382_v36 = vadd.f32 %v2978_v35, %v2645_v34  ;;  %v2376_v37 = vpop.f32.mrb[15].mxu0 }
 0xe3b   :  { %v2377_v38 = vadd.f32 %v2645_v34, %v2376_v37 }
 0xe3c   :  { %v2388_v49 = vmul.f32 0.70710677, %v2382_v36  ;;  %v2386_v45 = vmul.f32 0.5, %v2382_v36 }
 0xe3d   :  { %v2387_v39 = vmul.f32 0.70710677, %v2377_v38  ;;  %v2385_v44 = vmul.f32 0.5, %v2377_v38 }
 0xe3e   :  { %3284 = verf.f32 %v2388_v49 }
 0xe3f   :  { %3286 = verf.f32 %v2387_v39 }
 0xe48   :  { %v3285_v40 = vpop.eup %3284 }
 0xe49   :  { %v3287_v41 = vpop.eup %3286  ;;  %v2392_v43 = vadd.f32 1.0, %v3285_v40 }
 0xe4a   :  { %v2391_v17 = vadd.f32 1.0, %v3287_v41 }
 0xe4b   :  { %v2394_v47 = vmul.f32 %v2392_v43, %v2386_v45 }
 0xe4c   :  { %v2393_v46 = vmul.f32 %v2391_v17, %v2385_v44 }
 0xe4e   :  { %2995 = vmatprep.mubr.msk.f32.mxu0 %vm1192_vm3, %v2393_v46 }
 0xe4f   :  { %2996 = vmatmul.mubr.msk.f32.vlgmr.msra.gmra.mrb[16].mxu0 %vm1192_vm3, %v2394_v47 }
 0xf22   :  { %v2997_v50 = vpop.f32.mrb[16].mxu0 }
 0xf23   :  { %v2486_v52 = vadd.f32 %v2997_v50, %v2290_v22  ;;  %v2476_v56 = vpop.f32.mrb[17].mxu0 }
 0xf24   :  { %v2485_v57 = vadd.f32 %v2476_v56, %v2289_v21 }
 0xf25   :  { %v2496_v53 = vadd.f32 %v2659_v51, %v2486_v52 }
 0xf26   :  { %v2495_v54 = vadd.f32 %v2659_v51, %v2485_v57 }
 0xf27   :  { %v2502_v55 = vsel %vm79_vm0, %v2496_v53, 0.0 }
 0xf28   :  { %2503 = vadd.xlane.f32.xlu0 %v2502_v55  ;;  %v2499_v58 = vsel %vm79_vm0, %v2495_v54, 0.0 }
 0xf29   :  { %2500 = vadd.xlane.f32.xlu1 %v2499_v58 }
 0xfb5   :  { %v2504_v59 = vpop.xlane.xlu0 %2503 }
 0xfb6   :  { %v2506_v60 = vmul.f32 0.03125, %v2504_v59  ;;  %v2501_v61 = vpop.xlane.xlu1 %2500 }
 0xfb7   :  { %v2505_v62 = vmul.f32 0.03125, %v2501_v61 }
 0xfb8   :  { %v2508_v63 = vsub.f32 %v2496_v53, %v2506_v60 }
 0xfb9   :  { %v2507_v1 = vsub.f32 %v2495_v54, %v2505_v62 }
 0xfba   :  { %v2510_v18 = vmul.f32 %v2508_v63, %v2508_v63 }
 0xfbb   :  { %v2509_v2 = vmul.f32 %v2507_v1, %v2507_v1 }
 0xfbc   :  { %v2514_v3 = vsel %vm79_vm0, %v2510_v18, 0.0 }
 0xfbd   :  { %v2511_v0 = vsel %vm79_vm0, %v2509_v2, 0.0 }
 0xfbe   :  { %2512 = vadd.xlane.f32.xlu1 %v2511_v0 }
 0xfc2   :  { %2515 = vadd.xlane.f32.xlu1 %v2514_v3 }
0x104b   :  { %v2513_v4 = vpop.xlane.xlu1 %2512 }
0x104c   :  { %v2517_v5 = vmul.f32 0.03125, %v2513_v4 }
0x104e   :  { %v2519_v6 = vadd.f32 1e-05, %v2517_v5 }
0x104f   :  { %v2516_v7 = vpop.xlane.xlu1 %2515 }
0x1050   :  { %3288 = vrsqrt.f32 %v2519_v6  ;;  %v2518_v8 = vmul.f32 0.03125, %v2516_v7 }
0x1052   :  { %v2520_v9 = vadd.f32 1e-05, %v2518_v8 }
0x1054   :  { %3290 = vrsqrt.f32 %v2520_v9 }
0x105a   :  { %v3289_v10 = vpop.eup %3288 }
0x105b   :  { %v2523_v12 = vmul.f32 %v3289_v10, %v2507_v1 }
0x105d   :  { %v2531_v14 = vmul.f32 %v2660_v11, %v2523_v12 }
0x105e   :  { %v3291_v15 = vpop.eup %3290 }
0x105f   :  { %v2524_v16 = vmul.f32 %v3291_v15, %v2508_v63  ;;  %v2539_v48 = vadd.f32 %v2661_v13, %v2531_v14 }
0x1061   :  { %v2532_v19 = vmul.f32 %v2660_v11, %v2524_v16  ;;  %2541 = vst.msk [vmem:[#allocation8] sm:$0xff] %vm79_vm0, %v2539_v48 }
0x1063   :  { %v2540_v20 = vadd.f32 %v2661_v13, %v2532_v19 }
0x1065   :  { %2542 = vst.msk [vmem:[#allocation8 + $0x8] sm:$0xff] %vm79_vm0, %v2540_v20 }
0x1066   :  { %3347 = shalt.err (!%p3344_p6)
}
0x1067   :  { %s3348_s1 = scalar_lea.hbm %s3924_s13, 256 }
0x1068   :  { %p3349_p7 = scmp.ne.s32.totalorder %s3924_s13, %s3348_s1  ;;  %p3352_p8 = scmp.lt.u32.totalorder %s3348_s1, %s3924_s13 }
0x106a   :  { %p3354_p9 = pnand %p3352_p8, %p3349_p7 }
0x106c   :  { %3357 = shalt.err (!%p3354_p9)
}
0x106d   :  { %2554 = dma.vmem_to_hbm [thread:$0]  %s2549_s26, 256, %s3924_s13, [#allocation5], %s3365_s18, %s3365_s18, %s3366_s19  }
0x106e   :  { %3362 = dma.done.wait [#allocation5], 256  }
0x106f   :  { %3363 = vsyncadd [#allocation5], 4294967040 }
0x1070   :  { %2558 = vsyncpa [#allocation4], 1 }
0x1071   :  { %2559 = vsyncpa [#allocation7], 1 }
0x1072   :  { %2560 = vsyncpa [#allocation5], 1 }

</bundles_post_ra>
